<compile_context>
chip_gen: v5e
topology: v5e:2x2
jax: 0.10.0
libtpu: 0.0.40
codegen_flags: <defaults>
</compile_context>

<pallas_src>
import functools
import math

import jax
import jax.numpy as jnp
from jax.experimental import pallas as pl
from jax.experimental.pallas import tpu as pltpu

_LANE = 128
_NEG_INF = -1e30


def _qkv_attention_kernel(q_ref, k_ref, v_ref, o_ref, *, scale, valid_len,
                          needs_mask, matmul_dtype):
    # Blocks are (Hb, C, Tp); the batch / chunk dims are squeezed away.
    q = q_ref[...]
    k = k_ref[...]
    v = v_ref[...]

    # Apply 1/sqrt(T) to q and k on the small (Hb, C, Tp) tiles, in the input
    # dtype (matches the torch ordering) -- never on the (Tp, Tp) logits.
    q = q * scale
    k = k * scale

    if matmul_dtype is not None:
        # Optional MXU fast path (e.g. bf16 on v5e when inputs are f32);
        # small numerics delta vs pure-f32 torch, so off by default.
        q = q.astype(matmul_dtype)
        k = k.astype(matmul_dtype)
        v = v.astype(matmul_dtype)

    # logits[h, t, s] = sum_c q[h, c, t] * k[h, c, s]  -> (Hb, Tp, Tp) f32.
    # Contraction over the sublane (C) dim of both operands is the
    # transposed-LHS matmul form, natively supported by the MXU; only the
    # small (C, Tp) operand is ever relayouted, never anything (Tp, Tp)-sized.
    logits = jax.lax.dot_general(
        q, k,
        dimension_numbers=(((1,), (1,)), ((0,), (0,))),
        preferred_element_type=jnp.float32,
    )

    if needs_mask:
        # Keys beyond the real sequence length are zero padding: mask them.
        key_idx = jax.lax.broadcasted_iota(jnp.int32, logits.shape, 2)
        logits = jnp.where(key_idx < valid_len, logits, _NEG_INF)

    # Softmax numerator in f32; normalization is deferred to the (Hb, C, Tp)
    # output below so no (Tp, Tp)-wide normalization multiply is needed.
    # TODO(synk): exp dominates on v6e/v7x for C <= 128; a bf16 exp would
    # roughly halve the EUP time if the model tolerates the precision.
    m = jnp.max(logits, axis=-1, keepdims=True)
    p32 = jnp.exp(logits - m)
    denom = jnp.sum(p32, axis=-1, keepdims=True)          # (Hb, Tp, 1) f32
    p = p32.astype(v.dtype)                               # MXU-native width

    # out[h, c, t] = sum_s v[h, c, s] * p[h, t, s]  (transposed-RHS matmul,
    # natively supported; no materialized transpose of v or p).
    out = jax.lax.dot_general(
        v, p,
        dimension_numbers=(((2,), (2,)), ((0,), (0,))),
        preferred_element_type=jnp.float32,
    )

    # Deferred, exact normalization on the small (Hb, C, Tp) output.  The
    # (Hb, Tp, 1) -> (Hb, 1, Tp) relayout moves only Hb*Tp values (tiny XLU
    # op, hidden under the MXU/EUP work).
    inv = pl.reciprocal(denom, approx=False)
    out = out * jnp.transpose(inv, (0, 2, 1))
    o_ref[...] = out.astype(o_ref.dtype)


def _physical_vmem_bytes():
    """Per-core VMEM capacity; conservative (v7x-sized) fallback."""
    try:
        return int(pltpu.get_tpu_info().vmem_capacity_bytes)
    except Exception:
        return 64 << 20


def _per_head_vmem_bytes(channel, padded_len, itemsize):
    # q, k, v, out tiles, each double-buffered by the pipeline ...
    io = 4 * 2 * channel * padded_len * itemsize
    # ... plus the transient (Tp, Tp) intermediates: f32 logits, f32 exp and
    # the cast probabilities can briefly coexist.
    scratch = padded_len * padded_len * (4 + 4 + itemsize)
    return io + scratch


def _pick_heads_per_block(batch_size, n_heads, channel, padded_len, itemsize,
                          vmem_budget_bytes):
    """Largest head count per grid step that (a) divides n_heads, (b) fits the
    per-step VMEM budget, (c) keeps >= 2 grid steps when possible, and
    (d) prefers an even total step count so both v7x TensorCores get work."""
    per_head = _per_head_vmem_bytes(channel, padded_len, itemsize)
    max_hb = max(1, int(vmem_budget_bytes // per_head))

    valid = []
    for cand in range(1, n_heads + 1):
        if n_heads % cand != 0 or cand > max_hb:
            continue
        steps = batch_size * (n_heads // cand)
        if steps < 2 and batch_size * n_heads >= 2:
            continue
        valid.append(cand)
    if not valid:
        return 1
    best = max(valid)
    even = [c for c in valid if (batch_size * (n_heads // c)) % 2 == 0]
    # Take the even-step candidate unless it would more than double the steps.
    if even and 2 * max(even) >= best:
        best = max(even)
    return best


def qkv_attention(qkv, n_heads, *, matmul_dtype=None):
    """qkv: [N, 3*H*C, T] -> [N, H*C, T]; same semantics as the torch module.

    matmul_dtype: optional operand dtype for the two MXU matmuls (e.g.
    jnp.bfloat16 on v5e with f32 inputs).  Default None keeps the input dtype
    so results match the f32 torch reference.
    """
    batch_size, width, length = qkv.shape
    assert width % (3 * n_heads) == 0
    channel = width // (3 * n_heads)
    scale = 1.0 / math.sqrt(length)

    # Free reshape; the q/k/v split is done by the BlockSpec index_maps below.
    qkv5 = qkv.reshape(batch_size, 3, n_heads, channel, length)

    # Pad T up to a lane-dense multiple of 128 (masked inside the kernel) so
    # output stores are unmasked and MXU tiles are fully populated.
    padded_len = max(_LANE, ((length + _LANE - 1) // _LANE) * _LANE)
    needs_mask = padded_len != length
    if needs_mask:
        qkv5 = jnp.pad(qkv5, ((0, 0),) * 4 + ((0, padded_len - length),))

    itemsize = qkv.dtype.itemsize

    # Generation-aware VMEM budgeting: ~3/8 of physical VMEM for the working
    # set, scoped limit capped at 7/8 physical (headroom for Mosaic scratch).
    #   v5e/v6e (128 MiB): budget 48 MiB, cap 112 MiB.
    #   v7x     ( 64 MiB): budget 24 MiB, cap  56 MiB.
    phys_vmem = _physical_vmem_bytes()
    budget = (phys_vmem * 3) // 8
    cap = (phys_vmem * 7) // 8

    hb = _pick_heads_per_block(batch_size, n_heads, channel, padded_len,
                               itemsize, budget)
    grid = (batch_size, n_heads // hb)

    # per_step already includes double-buffered I/O + transient scratch.
    per_step = hb * _per_head_vmem_bytes(channel, padded_len, itemsize)
    vmem_limit = int(min(max(per_step + (8 << 20), 32 << 20), cap))
    # TODO(synk): for very large T (VMEM-bound even at hb=1; ~2k on v7x)
    # switch to a key-tiled online-softmax so the (Tp, Tp) logits never
    # materialize in VMEM.

    def chunk_spec(chunk):
        # Block of hb heads of the `chunk`-th third (0=q, 1=k, 2=v).
        return pl.BlockSpec(
            (None, None, hb, channel, padded_len),
            lambda n, h, c=chunk: (n, c, h, 0, 0))

    out_spec = pl.BlockSpec(
        (None, hb, channel, padded_len),
        lambda n, h: (n, h, 0, 0))

    cost = pl.CostEstimate(
        flops=4 * batch_size * n_heads * channel * padded_len * padded_len,
        transcendentals=batch_size * n_heads * padded_len * padded_len,
        bytes_accessed=4 * batch_size * n_heads * channel * padded_len * itemsize,
    )

    kernel = functools.partial(
        _qkv_attention_kernel, scale=scale, valid_len=length,
        needs_mask=needs_mask, matmul_dtype=matmul_dtype)

    out = pl.pallas_call(
        kernel,
        out_shape=jax.ShapeDtypeStruct(
            (batch_size, n_heads, channel, padded_len), qkv.dtype),
        grid_spec=pltpu.PrefetchScalarGridSpec(
            num_scalar_prefetch=0,
            grid=grid,
            in_specs=[chunk_spec(0), chunk_spec(1), chunk_spec(2)],
            out_specs=out_spec,
        ),
        compiler_params=pltpu.CompilerParams(
            dimension_semantics=("parallel", "parallel"),
            vmem_limit_bytes=vmem_limit,
        ),
        cost_estimate=cost,
    )(qkv5, qkv5, qkv5)

    if needs_mask:
        out = out[..., :length]
    return out.reshape(batch_size, n_heads * channel, length)


def _reference(qkv, n_heads):
    """Pure-JAX reference mirroring the torch forward exactly."""
    batch_size, width, length = qkv.shape
    channel = width // (3 * n_heads)
    q, k, v = jnp.split(qkv, 3, axis=1)
    scale = 1.0 / math.sqrt(length)
    q = (q * scale).reshape(batch_size * n_heads, channel, length)
    k = (k * scale).reshape(batch_size * n_heads, channel, length)
    v = v.reshape(batch_size * n_heads, channel, length)
    w = jnp.einsum("bct,bcs->bts", q, k)
    w = jax.nn.softmax(w.astype(jnp.float32), axis=-1).astype(w.dtype)
    r = jnp.einsum("bts,bcs->bct", w, v)
    return r.reshape(batch_size, -1, length)


if __name__ == "__main__":
    n_heads = 2
    batch = 2
    channel = 8
    length = 16
    width = 3 * n_heads * channel  # 48

    key = jax.random.PRNGKey(0)
    qkv = jax.random.normal(key, (batch, width, length), dtype=jnp.float32)

    out = qkv_attention(qkv, n_heads)
    out = jax.block_until_ready(out)

    ref = _reference(qkv, n_heads)
    assert out.shape == (batch, n_heads * channel, length)
    # Exact softmax reciprocal now; tolerance only covers MXU f32 accumulation
    # order differences.
    assert jnp.allclose(out, ref, atol=2e-3, rtol=2e-3), "mismatch vs reference"

    print("KERNEL_OK")
</pallas_src>

<mosaic_0001>
module attributes {stable_mosaic.version = 11 : i64} {
  func.func @_qkv_attention_kernel(%arg0: i32, %arg1: i32, %arg2: memref<1x1x2x8x128xf32, #tpu.memory_space<vmem>>, %arg3: memref<1x1x2x8x128xf32, #tpu.memory_space<vmem>>, %arg4: memref<1x1x2x8x128xf32, #tpu.memory_space<vmem>>, %arg5: memref<1x2x8x128xf32, #tpu.memory_space<vmem>>) attributes {dimension_semantics = [#tpu.dimension_semantics<parallel>, #tpu.dimension_semantics<parallel>], iteration_bounds = array<i64: 2, 1>, scalar_prefetch = 0 : i64, scratch_operands = 0 : i64, tpu.core_type = #tpu.core_type<tc>, window_params = [{transform_indices = @transform_0, window_bounds = array<i64: 1, 1, 2, 8, 128>}, {transform_indices = @transform_1, window_bounds = array<i64: 1, 1, 2, 8, 128>}, {transform_indices = @transform_2, window_bounds = array<i64: 1, 1, 2, 8, 128>}, {transform_indices = @transform_3, window_bounds = array<i64: 1, 2, 8, 128>}]} {
    %c0 = arith.constant 0 : index
    %c0_0 = arith.constant 0 : index
    %c0_1 = arith.constant 0 : index
    %c0_2 = arith.constant 0 : index
    %c0_3 = arith.constant 0 : index
    %0 = vector.load %arg2[%c0, %c0_0, %c0_1, %c0_2, %c0_3] : memref<1x1x2x8x128xf32, #tpu.memory_space<vmem>>, vector<1x1x2x8x128xf32>
    %1 = vector.shape_cast %0 : vector<1x1x2x8x128xf32> to vector<2x8x128xf32>
    %c0_4 = arith.constant 0 : index
    %c0_5 = arith.constant 0 : index
    %c0_6 = arith.constant 0 : index
    %c0_7 = arith.constant 0 : index
    %c0_8 = arith.constant 0 : index
    %2 = vector.load %arg3[%c0_4, %c0_5, %c0_6, %c0_7, %c0_8] : memref<1x1x2x8x128xf32, #tpu.memory_space<vmem>>, vector<1x1x2x8x128xf32>
    %3 = vector.shape_cast %2 : vector<1x1x2x8x128xf32> to vector<2x8x128xf32>
    %c0_9 = arith.constant 0 : index
    %c0_10 = arith.constant 0 : index
    %c0_11 = arith.constant 0 : index
    %c0_12 = arith.constant 0 : index
    %c0_13 = arith.constant 0 : index
    %4 = vector.load %arg4[%c0_9, %c0_10, %c0_11, %c0_12, %c0_13] : memref<1x1x2x8x128xf32, #tpu.memory_space<vmem>>, vector<1x1x2x8x128xf32>
    %5 = vector.shape_cast %4 : vector<1x1x2x8x128xf32> to vector<2x8x128xf32>
    %cst = arith.constant 2.500000e-01 : f32
    %6 = vector.broadcast %cst : f32 to vector<2x8x128xf32>
    %7 = arith.mulf %1, %6 : vector<2x8x128xf32>
    %cst_14 = arith.constant 2.500000e-01 : f32
    %8 = vector.broadcast %cst_14 : f32 to vector<2x8x128xf32>
    %9 = arith.mulf %3, %8 : vector<2x8x128xf32>
    %cst_15 = arith.constant dense<0.000000e+00> : vector<2x128x128xf32>
    %10 = tpu.matmul %7, %9, %cst_15 {dimension_numbers = #tpu.dot_dimension_numbers<[1], [1], [2], [2], [0, 0, 0, 2, 1, 2], [0], [0]>} : vector<2x8x128xf32>, vector<2x8x128xf32>, vector<2x128x128xf32> -> vector<2x128x128xf32>
    %11 = tpu.iota {dimensions = array<i32: 2>} : vector<2x128x128xi32>
    %c16_i32 = arith.constant 16 : i32
    %12 = vector.broadcast %c16_i32 : i32 to vector<2x128x128xi32>
    %13 = arith.cmpi slt, %11, %12 : vector<2x128x128xi32>
    %cst_16 = arith.constant -1.000000e+30 : f32
    %14 = vector.broadcast %cst_16 : f32 to vector<2x128x128xf32>
    %15 = arith.select %13, %10, %14 : vector<2x128x128xi1>, vector<2x128x128xf32>
    %cst_17 = arith.constant dense<0xFF800000> : vector<2x128xf32>
    %16 = vector.multi_reduction <maximumf>, %15, %cst_17 [2] : vector<2x128x128xf32> to vector<2x128xf32>
    %17 = vector.shape_cast %16 : vector<2x128xf32> to vector<2x128x1xf32>
    %18 = vector.broadcast %17 : vector<2x128x1xf32> to vector<2x128x128xf32>
    %19 = arith.subf %15, %18 : vector<2x128x128xf32>
    %20 = math.exp %19 : vector<2x128x128xf32>
    %cst_18 = arith.constant dense<0.000000e+00> : vector<2x128xf32>
    %21 = vector.multi_reduction <add>, %20, %cst_18 [2] : vector<2x128x128xf32> to vector<2x128xf32>
    %22 = vector.shape_cast %21 : vector<2x128xf32> to vector<2x128x1xf32>
    %cst_19 = arith.constant dense<0.000000e+00> : vector<2x8x128xf32>
    %23 = tpu.matmul %5, %20, %cst_19 {dimension_numbers = #tpu.dot_dimension_numbers<[2], [2], [1], [1], [0, 0, 0, 1, 1, 1], [0], [0]>} : vector<2x8x128xf32>, vector<2x128x128xf32>, vector<2x8x128xf32> -> vector<2x8x128xf32>
    %24 = tpu.reciprocal %22 : vector<2x128x1xf32> -> vector<2x128x1xf32>
    %25 = tpu.transpose %24, [0, 2, 1] : vector<2x128x1xf32> -> vector<2x1x128xf32>
    %26 = vector.broadcast %25 : vector<2x1x128xf32> to vector<2x8x128xf32>
    %27 = arith.mulf %23, %26 : vector<2x8x128xf32>
    %c0_20 = arith.constant 0 : index
    %c0_21 = arith.constant 0 : index
    %c0_22 = arith.constant 0 : index
    %c0_23 = arith.constant 0 : index
    %28 = vector.load %arg5[%c0_20, %c0_21, %c0_22, %c0_23] : memref<1x2x8x128xf32, #tpu.memory_space<vmem>>, vector<1x2x8x128xf32>
    %29 = vector.shape_cast %28 : vector<1x2x8x128xf32> to vector<2x8x128xf32>
    %30 = vector.shape_cast %27 : vector<2x8x128xf32> to vector<1x2x8x128xf32>
    tpu.vector_store %arg5[%c0_20, %c0_21, %c0_22, %c0_23], %30 {strides = array<i32>} : memref<1x2x8x128xf32, #tpu.memory_space<vmem>>, vector<1x2x8x128xf32>,
    return
  }
  func.func @transform_0(%arg0: i32, %arg1: i32) -> (i32, i32, i32, i32, i32) {
    %c0_i32 = arith.constant 0 : i32
    %c0_i32_0 = arith.constant 0 : i32
    %c0_i32_1 = arith.constant 0 : i32
    %c0_i32_2 = arith.constant 0 : i32
    return %arg0, %c0_i32, %arg1, %c0_i32_0, %c0_i32_1 : i32, i32, i32, i32, i32
  }
  func.func @transform_1(%arg0: i32, %arg1: i32) -> (i32, i32, i32, i32, i32) {
    %c1_i32 = arith.constant 1 : i32
    %c0_i32 = arith.constant 0 : i32
    %c0_i32_0 = arith.constant 0 : i32
    %c0_i32_1 = arith.constant 0 : i32
    return %arg0, %c1_i32, %arg1, %c0_i32, %c0_i32_0 : i32, i32, i32, i32, i32
  }
  func.func @transform_2(%arg0: i32, %arg1: i32) -> (i32, i32, i32, i32, i32) {
    %c2_i32 = arith.constant 2 : i32
    %c0_i32 = arith.constant 0 : i32
    %c0_i32_0 = arith.constant 0 : i32
    %c0_i32_1 = arith.constant 0 : i32
    return %arg0, %c2_i32, %arg1, %c0_i32, %c0_i32_0 : i32, i32, i32, i32, i32
  }
  func.func @transform_3(%arg0: i32, %arg1: i32) -> (i32, i32, i32, i32) {
    %c0_i32 = arith.constant 0 : i32
    %c0_i32_0 = arith.constant 0 : i32
    %c0_i32_1 = arith.constant 0 : i32
    return %arg0, %arg1, %c0_i32, %c0_i32_0 : i32, i32, i32, i32
  }
}

</mosaic_0001>

<bundles_post_ra>
// kernel: tpu_custom_call.1
= control target key start
LH: loop header
LB: loop body
LE: loop exit
PB: predicated region body
PF: predicated region fallthrough
CT: control target
= control target key end

     0   :  { %s2991_s0 = inlined_call_operand.hbm [shape: f32[2,3,2,8,128], index: 0, kind: input, shape index: {}]   ;;  %s2992_s1 = inlined_call_operand.hbm [shape: f32[2,3,2,8,128], index: 1, kind: input, shape index: {}]   ;;  %s2993_s2 = inlined_call_operand.hbm [shape: f32[2,3,2,8,128], index: 2, kind: input, shape index: {}]   ;;  %s2994_s3 = inlined_call_operand.hbm [shape: f32[2,2,8,128], index: 3, kind: output, shape index: {}]  }
   0x1   :  { %3001 = sst [smem:[#allocation18_spill]] %s2992_s1 }
   0x2   :  { %8 = vsyncpa [#allocation3], 0 }
   0x3   :  { %10 = vsyncpa [#allocation3 + $0x1], 0 }
   0x4   :  { %11 = vsyncpa [#allocation6], 0 }
   0x5   :  { %13 = vsyncpa [#allocation6 + $0x1], 0 }
   0x6   :  { %14 = vsyncpa [#allocation4], 0 }
   0x7   :  { %16 = vsyncpa [#allocation4 + $0x1], 0  ;;  %s2039_s12 = smov 0   ;;  %s2041_s13 = smov 0  }
   0x8   :  { %s2043_s14 = smov 0   ;;  %s2045_s15 = smov 0  }
   0x9   :  { %s2047_s16 = smov 0   ;;  %s2049_s17 = smov 0  }
   0xa LB: > { %3002 = sst [smem:[#allocation12_spill]] %s2001_s14  ;;  %s2070_s18 = sadd.s32 4294967295, %s2013_s17   ;;  %s2013_s17 = sphi %s2049_s17, %s22_s17   ;;  %s2009_s16 = sphi %s2047_s16, %s3036_s16   ;;  %s2005_s15 = sphi %s2045_s15, %s3035_s15   ;;  %s2001_s14 = sphi %s2043_s14, %s3039_s14   ;;  %s1997_s13 = sphi %s2041_s13, %s3038_s13   ;;  %s1993_s12 = sphi %s2039_s12, %s3037_s12  }
   0xb   : > { %3003 = sst [smem:[#allocation13_spill]] %s2009_s16  ;;  %s1579_s19 = sadd.s32 4294967294, %s2013_s17  }
   0xc   : > { %3004 = sst [smem:[#allocation14_spill]] %s2013_s17  ;;  %s34_s20 = sadd.s32 1, %s2009_s16 }
   0xd   : > { %s43_s21 = sadd.s32 1, %s2001_s14  ;;  %p36_p0 = scmp.ge.s32.totalorder %s34_s20, 2 }
   0xe   : > { %p50_p1 = scmp.ne.s32.totalorder %s2001_s14, %s1997_s13  ;;  %p51_p2 = scmp.eq.s32.totalorder %s2013_s17, 0 }
   0xf   : > { %p56_p3 = scmp.ne.s32.totalorder %s1997_s13, %s1993_s12  ;;  %s3041_s20 = smov (%p36_p0, %s34_s20), 0 }
  0x10   : > { %3005 = sst [smem:[#allocation15_spill]] %s3041_s20  ;;  %p2082_p4 = por %p51_p2, %p50_p1 }
  0x11   : > { %p57_p5 = scmp.eq.s32.totalorder %s2070_s18, 0  ;;  %s38_s23 = ssub.s32 %s2009_s16, %s3041_s20 }
  0x12   : > { %p138_p6 = scmp.eq.s32.totalorder %s2070_s18, 1  ;;  %p41_p7 = scmp.eq.s32.totalorder %s38_s23, 0 }
  0x13   : > { %p2090_p8 = por %p57_p5, %p56_p3  ;;  %p144_p10 = scmp.eq.s32.totalorder %s1579_s19, 1 }
  0x14   : > { %p2094_p9 = por %p138_p6, %p50_p1  ;;  %p1581_p12 = scmp.ge.s32.totalorder %s2013_s17, 2 }
  0x15   : > { %s2099_s26 = scalar_select %p41_p7, %s2001_s14, %s43_s21  }
  0x16   : > { %p2101_p11 = por %p144_p10, %p56_p3  ;;  %p1654_p13 = scmp.lt.s32.totalorder %s2013_s17, 2 }
  0x17   : > { %3009 = sst [smem:[#allocation16_spill]] %s2099_s26  ;;  %s164_s28 = sand.u32 1, %s2001_s14  }
  0x18   : > { %s3010_s27 = scalar_select %p2101_p11, 1, 0 }
  0x19   : > { %s2108_s29 = sshll.u32 %s164_s28, 4  ;;  %s2111_s30 = smul.u32 48, %s2009_s16 }
  0x1a   : > { %3011 = sst [smem:[#allocation17_spill]] %s3010_s27  ;;  %p2115_p0 = pnand %p1654_p13, %p2082_p4 }
  0x1b   : > { %s188_s5 = sand.u32 1, %s2013_s17   ;;  %s3013_s1 = sld [smem:[#allocation18_spill]] }
  0x1c   : > { %s192_s10 = scalar_lea.vmem [#allocation5], %s2108_s29  ;;  %p1588_p1 = scmp.ge.s32.totalorder %s2013_s17, 1 }
  0x1d   : > { %s203_s11 = sshll.u32 %s192_s10, 4  ;;  %s189_s21 = scalar_lea.sflag [#allocation6], %s188_s5  ;;  %s204_s11 = int_to_ptr.vmem [resolvable:$true] %s203_s11 }
  0x1e   : > { %s2015_s22 = smov 128   ;;  %s2016_s23 = smov 8  }
  0x1f   : > { %p236_p2 = scmp.lt.s32.totalorder %s2013_s17, 3  ;;  %s168_s10 = scalar_lea.vmem [#allocation2], %s2108_s29 }
  0x20   : > { %s165_s5 = scalar_lea.sflag [#allocation3], %s164_s28  ;;  %s217_s26 = scalar_lea.vmem [#allocation7], %s2108_s29 }
  0x21   : > { %s1485_s8 = scalar_lea.hbm %s3013_s1, %s2111_s30  ;;  %p2129_p3 = pnand %p1588_p1, %p236_p2 }
  0x22   : > { %s1486_s9 = scalar_lea.hbm %s1485_s8, 16  ;;  %s178_s1 = sshll.u32 %s168_s10, 4  ;;  %s179_s1 = int_to_ptr.vmem [resolvable:$true] %s178_s1 }
  0x23   : > { %s201_s19 = sshll.u32 %s1486_s9, 4  ;;  %s175_s9 = scalar_lea.hbm %s2991_s0, %s2111_s30  ;;  %s202_s19 = int_to_ptr.hbm [resolvable:$true] %s201_s19 }
  0x24   : > { %1646 = dma.hbm_to_vmem [thread:$0]  (!%p2115_p0), %s202_s19, 256, %s204_s11, %s189_s21, %s2015_s22, %s2015_s22, %s2016_s23  }
  0x25   : > { %s176_s20 = sshll.u32 %s175_s9, 4  ;;  %s1494_s19 = scalar_lea.hbm %s2993_s2, %s2111_s30  ;;  %s177_s20 = int_to_ptr.hbm [resolvable:$true] %s176_s20 }
  0x26   : > { %1643 = dma.hbm_to_vmem [thread:$0]  (!%p2115_p0), %s177_s20, 256, %s179_s1, %s165_s5, %s2015_s22, %s2015_s22, %s2016_s23  }
  0x27   : > { %s228_s14 = sshll.u32 %s217_s26, 4  ;;  %s1495_s17 = scalar_lea.hbm %s1494_s19, 32  ;;  %s229_s14 = int_to_ptr.vmem [resolvable:$true] %s228_s14 }
  0x28   : > { %s226_s27 = sshll.u32 %s1495_s17, 4  ;;  %240 = sbr.rel (%p2129_p3) target bundleno = 974 (0x3ce), region = 32  ;;  %s227_s27 = int_to_ptr.hbm [resolvable:$true] %s226_s27 }
  0x29   : > { %1649 = dma.hbm_to_vmem [thread:$0]  (!%p2115_p0), %s227_s27, 256, %s229_s14, %s189_s21, %s2015_s22, %s2015_s22, %s2016_s23  }
  0x2a   : > { %s2150_s28 = sand.u32 (!%p2129_p3), 1, %s1997_s13  }
  0x2b   : > { %s2153_s1 = sshll.u32 (!%p2129_p3), %s2150_s28, 4  ;;  %s243_s16 = scalar_lea.sflag (!%p2129_p3), [#allocation3], %s2150_s28 }
  0x2c   : > { %s246_s20 = scalar_lea.vmem (!%p2129_p3), [#allocation2], %s2153_s1 }
  0x2d   : > { %1980 = dma.done.wait (%p2090_p8), %s243_s16, 256  }
  0x2e   : > { %1982 = vsyncadd (%p2090_p8), %s243_s16, 4294967040  ;;  %s252_s14 = sand.u32 1, %s2070_s18   ;;  %s256_s26 = scalar_lea.vmem [#allocation5], %s2153_s1 }
  0x2f   : > { %s253_s17 = scalar_lea.sflag [#allocation6], %s252_s14 }
  0x30   : > { %1984 = dma.done.wait (%p2090_p8), %s253_s17, 512  }
  0x31   : > { %1986 = vsyncadd (%p2090_p8), %s253_s17, 4294966784  ;;  %v304_v0 = vld [vmem:[%s246_s20] sm:$0xff]  ;;  %v305_v4 = vld [vmem:[%s246_s20 + $0x8] sm:$0xff]  ;;  %vm346_vm0 = vcmask 64512   ;;  %v605_v23 = vlaneseq  ;;  %s266_s18 = scalar_lea.vmem [#allocation7], %s2153_s1  ;;  %s299_s24 = scalar_lea.vmem [#allocation8], %s2153_s1 }
  0x32   : > { %v310_v1 = vmul.f32 0.25, %v304_v0  ;;  %v306_v2 = vld [vmem:[%s256_s26] sm:$0xff]  ;;  %v311_v5 = vmul.f32 0.25, %v305_v4  ;;  %v307_v18 = vld [vmem:[%s256_s26 + $0x8] sm:$0xff]  ;;  %s1630_s27 = sshll.u32 %s2005_s15, 4  ;;  %s1437_s21 = sshll.u32 %s299_s24, 4  ;;  %s1438_s21 = int_to_ptr.vmem [resolvable:$true] %s1437_s21 }
  0x33   : > { %v312_v3 = vmul.f32 0.25, %v306_v2  ;;  %v313_v19 = vmul.f32 0.25, %v307_v18  ;;  %v2186_v25 = vand.u32 127, %v605_v23  ;;  %s1436_s4 = scalar_lea.hbm %s2994_s3, %s1630_s27  ;;  %s1423_s23 = scalar_lea.sflag [#allocation4], %s2150_s28 }
  0x34   : > { %314 = vxpose.xlu0.b32.start.end [1/1] (short) %v310_v1, 128  ;;  %s1439_s22 = sshll.u32 %s1436_s4, 4  ;;  %s1947_s9 = scalar_lea.hbm %s2994_s3, 32  ;;  %s1440_s22 = int_to_ptr.hbm [resolvable:$true] %s1439_s22 }
  0x35   : > { %410 = vmatpush.msra.mxu0 %v312_v3  ;;  %555 = vmatpush.msra.mxu1 %v313_v19  ;;  %vm607_vm1 = vcmp.lt.s32.totalorder %v2186_v25, 16  ;;  %s1941_s6 = sshra.s32 %s1440_s22, 4  ;;  %s1942_s6 = int_to_ptr.hbm [resolvable:$true] %s1941_s6 }
  0x36   : > { %s1943_s7 = scalar_lea.hbm %s1942_s6, 16  ;;  %p1948_p7 = scmp.lt.s32.totalorder %s1942_s6, %s2994_s3 }
  0x37   : > { %p1944_p4 = scmp.ne.s32.totalorder %s1942_s6, %s1943_s7  ;;  %p1949_p8 = scmp.lt.s32.totalorder %s1947_s9, %s1943_s7 }
  0x39   : > { %p1945_p5 = pnand %p1944_p4, %p2094_p9  ;;  %p1950_p10 = por %p1949_p8, %p1948_p7 }
  0x3b   : > { %p1946_p6 = pneg %p1945_p5 }
  0x3d   : > { %p1951_p13 = pnand %p1950_p10, %p1946_p6 }
  0xb4   : > { %460 = vxpose.xlu0.b32.start.end [1/1] (short) %v311_v5, 128 }
  0xd8   : > { %v330_v6 = vpop.trf.xlu0 }
  0xd9   : > { %1593 = vmatmul.msk.f32.vlgmr.msra.gmra.mxu0 %vm346_vm0, %v330_v6 }
  0xe0   : > { %v331_v7 = vpop.trf.xlu0 }
  0xe1   : > { %1594 = vmatmul.msk.f32.gmra.mxu0 %vm346_vm0, %v331_v7 }
  0xe8   : > { %v332_v8 = vpop.trf.xlu0 }
  0xe9   : > { %1595 = vmatmul.msk.f32.gmra.mxu0 %vm346_vm0, %v332_v8 }
  0xf0   : > { %v333_v9 = vpop.trf.xlu0 }
  0xf1   : > { %1596 = vmatmul.msk.f32.gmra.mxu0 %vm346_vm0, %v333_v9 }
  0xf8   : > { %v334_v10 = vpop.trf.xlu0 }
  0xf9   : > { %1597 = vmatmul.msk.f32.gmra.mxu0 %vm346_vm0, %v334_v10 }
 0x100   : > { %v335_v11 = vpop.trf.xlu0 }
 0x101   : > { %1598 = vmatmul.msk.f32.gmra.mxu0 %vm346_vm0, %v335_v11 }
 0x108   : > { %v336_v12 = vpop.trf.xlu0 }
 0x109   : > { %1599 = vmatmul.msk.f32.gmra.mxu0 %vm346_vm0, %v336_v12 }
 0x110   : > { %v337_v13 = vpop.trf.xlu0 }
 0x111   : > { %1600 = vmatmul.msk.f32.gmra.mxu0 %vm346_vm0, %v337_v13 }
 0x118   : > { %v338_v14 = vpop.trf.xlu0 }
 0x119   : > { %1601 = vmatmul.msk.f32.gmra.mxu0 %vm346_vm0, %v338_v14 }
 0x120   : > { %v339_v15 = vpop.trf.xlu0 }
 0x121   : > { %1602 = vmatmul.msk.f32.gmra.mxu0 %vm346_vm0, %v339_v15 }
 0x128   : > { %v340_v16 = vpop.trf.xlu0 }
 0x129   : > { %1603 = vmatmul.msk.f32.gmra.mxu0 %vm346_vm0, %v340_v16 }
 0x130   : > { %v341_v17 = vpop.trf.xlu0 }
 0x131   : > { %1604 = vmatmul.msk.f32.gmra.mxu0 %vm346_vm0, %v341_v17 }
 0x138   : > { %v342_v20 = vpop.trf.xlu0 }
 0x139   : > { %1605 = vmatmul.msk.f32.gmra.mxu0 %vm346_vm0, %v342_v20 }
 0x140   : > { %v343_v21 = vpop.trf.xlu0 }
 0x141   : > { %1606 = vmatmul.msk.f32.gmra.mxu0 %vm346_vm0, %v343_v21 }
 0x148   : > { %v344_v22 = vpop.trf.xlu0 }
 0x149   : > { %1607 = vmatmul.msk.f32.gmra.mxu0 %vm346_vm0, %v344_v22 }
 0x150   : > { %v345_v24 = vpop.trf.xlu0 }
 0x151   : > { %1608 = vmatmul.msk.f32.gmra.mxu0 %vm346_vm0, %v345_v24 }
 0x156   : > { %v412_v26 = vpop.f32.mrf.mxu0 }
 0x157   : > { %v2192_v27 = vsel %vm607_vm1, %v412_v26, -1e+30 }
 0x158   : > { %640 = vmax.xlane.f32.xlu1 %v2192_v27  ;;  %v476_v28 = vpop.trf.xlu0 }
 0x159   : > { %1609 = vmatmul.msk.f32.vlgmr.msra.gmra.mxu1 %vm346_vm0, %v476_v28 }
 0x15e   : > { %v415_v41 = vpop.f32.mrf.mxu0 }
 0x15f   : > { %v2218_v51 = vsel %vm607_vm1, %v415_v41, -1e+30 }
 0x160   : > { %v477_v29 = vpop.trf.xlu0 }
 0x161   : > { %1610 = vmatmul.msk.f32.gmra.mxu1 %vm346_vm0, %v477_v29 }
 0x166   : > { %v418_v44 = vpop.f32.mrf.mxu0 }
 0x167   : > { %v2232_v55 = vsel %vm607_vm1, %v418_v44, -1e+30 }
 0x168   : > { %v478_v30 = vpop.trf.xlu0 }
 0x169   : > { %1611 = vmatmul.msk.f32.gmra.mxu1 %vm346_vm0, %v478_v30 }
 0x16e   : > { %v421_v46 = vpop.f32.mrf.mxu0 }
 0x16f   : > { %v2243_v61 = vsel %vm607_vm1, %v421_v46, -1e+30 }
 0x170   : > { %v479_v31 = vpop.trf.xlu0 }
 0x171   : > { %1612 = vmatmul.msk.f32.gmra.mxu1 %vm346_vm0, %v479_v31 }
 0x176   : > { %v424_v49 = vpop.f32.mrf.mxu0 }
 0x177   : > { %v2228_v54 = vsel %vm607_vm1, %v424_v49, -1e+30 }
 0x178   : > { %v480_v32 = vpop.trf.xlu0 }
 0x179   : > { %1613 = vmatmul.msk.f32.gmra.mxu1 %vm346_vm0, %v480_v32 }
 0x17e   : > { %v427_v56 = vpop.f32.mrf.mxu0 }
 0x17f   : > { %v2268_v7 = vsel %vm607_vm1, %v427_v56, -1e+30 }
 0x180   : > { %v481_v33 = vpop.trf.xlu0 }
 0x181   : > { %1614 = vmatmul.msk.f32.gmra.mxu1 %vm346_vm0, %v481_v33 }
 0x186   : > { %v430_v59 = vpop.f32.mrf.mxu0 }
 0x187   : > { %v2262_v5 = vsel %vm607_vm1, %v430_v59, -1e+30 }
 0x188   : > { %v482_v34 = vpop.trf.xlu0 }
 0x189   : > { %1615 = vmatmul.msk.f32.gmra.mxu1 %vm346_vm0, %v482_v34 }
 0x18e   : > { %v433_v62 = vpop.f32.mrf.mxu0 }
 0x18f   : > { %v2292_v16 = vsel %vm607_vm1, %v433_v62, -1e+30 }
 0x190   : > { %v483_v35 = vpop.trf.xlu0 }
 0x191   : > { %1616 = vmatmul.msk.f32.gmra.mxu1 %vm346_vm0, %v483_v35 }
 0x196   : > { %v436_v3 = vpop.f32.mrf.mxu0 }
 0x197   : > { %v2282_v12 = vsel %vm607_vm1, %v436_v3, -1e+30 }
 0x198   : > { %v484_v36 = vpop.trf.xlu0 }
 0x199   : > { %1617 = vmatmul.msk.f32.gmra.mxu1 %vm346_vm0, %v484_v36 }
 0x19e   : > { %v439_v9 = vpop.f32.mrf.mxu0 }
 0x19f   : > { %v2298_v19 = vsel %vm607_vm1, %v439_v9, -1e+30 }
 0x1a0   : > { %v485_v37 = vpop.trf.xlu0 }
 0x1a1   : > { %1618 = vmatmul.msk.f32.gmra.mxu1 %vm346_vm0, %v485_v37 }
 0x1a6   : > { %v442_v13 = vpop.f32.mrf.mxu0 }
 0x1a7   : > { %v2302_v20 = vsel %vm607_vm1, %v442_v13, -1e+30 }
 0x1a8   : > { %v486_v38 = vpop.trf.xlu0 }
 0x1a9   : > { %1619 = vmatmul.msk.f32.gmra.mxu1 %vm346_vm0, %v486_v38 }
 0x1ae   : > { %v445_v17 = vpop.f32.mrf.mxu0 }
 0x1af   : > { %v2322_v29 = vsel %vm607_vm1, %v445_v17, -1e+30 }
 0x1b0   : > { %v487_v39 = vpop.trf.xlu0 }
 0x1b1   : > { %1620 = vmatmul.msk.f32.gmra.mxu1 %vm346_vm0, %v487_v39 }
 0x1b6   : > { %v448_v23 = vpop.f32.mrf.mxu0 }
 0x1b7   : > { %v2332_v33 = vsel %vm607_vm1, %v448_v23, -1e+30 }
 0x1b8   : > { %v488_v40 = vpop.trf.xlu0 }
 0x1b9   : > { %1621 = vmatmul.msk.f32.gmra.mxu1 %vm346_vm0, %v488_v40 }
 0x1be   : > { %v451_v30 = vpop.f32.mrf.mxu0 }
 0x1bf   : > { %v2342_v37 = vsel %vm607_vm1, %v451_v30, -1e+30 }
 0x1c0   : > { %v489_v42 = vpop.trf.xlu0 }
 0x1c1   : > { %1622 = vmatmul.msk.f32.gmra.mxu1 %vm346_vm0, %v489_v42 }
 0x1c6   : > { %v454_v34 = vpop.f32.mrf.mxu0 }
 0x1c7   : > { %v2352_v42 = vsel %vm607_vm1, %v454_v34, -1e+30 }
 0x1c8   : > { %v490_v43 = vpop.trf.xlu0 }
 0x1c9   : > { %1623 = vmatmul.msk.f32.gmra.mxu1 %vm346_vm0, %v490_v43 }
 0x1cb   : > { %v641_v35 = vpop.xlane.xlu1 %640 }
 0x1cc   : > { %v704_v43 = vsub.f32 %v2192_v27, %v641_v35 }
 0x1ce   : > { %v457_v40 = vpop.f32.mrf.mxu0  ;;  %v736_v49 = vmul.f32 1.442695, %v704_v43 }
 0x1cf   : > { %v2348_v41 = vsel %vm607_vm1, %v457_v40, -1e+30 }
 0x1d0   : > { %v491_v45 = vpop.trf.xlu0 }
 0x1d1   : > { %1624 = vmatmul.msk.f32.gmra.mxu1 %vm346_vm0, %v491_v45 }
 0x1d6   : > { %v557_v47 = vpop.f32.mrf.mxu1 }
 0x1d7   : > { %v2213_v48 = vsel %vm607_vm1, %v557_v47, -1e+30 }
 0x1d8   : > { %672 = vmax.xlane.f32.xlu1 %v2213_v48 }
 0x1de   : > { %v560_v50 = vpop.f32.mrf.mxu1 }
 0x1df   : > { %v2222_v52 = vsel %vm607_vm1, %v560_v50, -1e+30 }
 0x1e0   : > { %642 = vmax.xlane.f32.xlu1 %v2218_v51  ;;  %674 = vmax.xlane.f32.xlu2 %v2222_v52 }
 0x1e6   : > { %v563_v53 = vpop.f32.mrf.mxu1 }
 0x1e7   : > { %v2238_v57 = vsel %vm607_vm1, %v563_v53, -1e+30 }
 0x1e8   : > { %648 = vmax.xlane.f32.xlu1 %v2228_v54  ;;  %644 = vmax.xlane.f32.xlu2 %v2232_v55 }
 0x1ee   : > { %v566_v58 = vpop.f32.mrf.mxu1 }
 0x1ef   : > { %v2248_v63 = vsel %vm607_vm1, %v566_v58, -1e+30 }
 0x1f0   : > { %676 = vmax.xlane.f32.xlu2 %v2238_v57 }
 0x1f6   : > { %v569_v60 = vpop.f32.mrf.mxu1 }
 0x1f7   : > { %v2258_v2 = vsel %vm607_vm1, %v569_v60, -1e+30 }
 0x1f8   : > { %646 = vmax.xlane.f32.xlu2 %v2243_v61 }
 0x1fe   : > { %v572_v0 = vpop.f32.mrf.mxu1 }
 0x1ff   : > { %v2252_v1 = vsel %vm607_vm1, %v572_v0, -1e+30 }
 0x200   : > { %678 = vmax.xlane.f32.xlu2 %v2248_v63  ;;  %682 = vmax.xlane.f32.xlu1 %v2252_v1 }
 0x206   : > { %v575_v4 = vpop.f32.mrf.mxu1 }
 0x207   : > { %v2278_v10 = vsel %vm607_vm1, %v575_v4, -1e+30 }
 0x208   : > { %680 = vmax.xlane.f32.xlu2 %v2258_v2  ;;  %652 = vmax.xlane.f32.xlu1 %v2262_v5 }
 0x20e   : > { %v578_v6 = vpop.f32.mrf.mxu1 }
 0x20f   : > { %v2272_v8 = vsel %vm607_vm1, %v578_v6, -1e+30 }
 0x210   : > { %650 = vmax.xlane.f32.xlu2 %v2268_v7  ;;  %686 = vmax.xlane.f32.xlu1 %v2272_v8 }
 0x216   : > { %v581_v11 = vpop.f32.mrf.mxu1 }
 0x217   : > { %v2288_v14 = vsel %vm607_vm1, %v581_v11, -1e+30 }
 0x218   : > { %684 = vmax.xlane.f32.xlu2 %v2278_v10  ;;  %656 = vmax.xlane.f32.xlu1 %v2282_v12 }
 0x21e   : > { %v584_v15 = vpop.f32.mrf.mxu1 }
 0x21f   : > { %v2308_v21 = vsel %vm607_vm1, %v584_v15, -1e+30 }
 0x220   : > { %654 = vmax.xlane.f32.xlu2 %v2292_v16  ;;  %688 = vmax.xlane.f32.xlu1 %v2288_v14 }
 0x226   : > { %v587_v18 = vpop.f32.mrf.mxu1 }
 0x227   : > { %v2312_v22 = vsel %vm607_vm1, %v587_v18, -1e+30 }
 0x228   : > { %658 = vmax.xlane.f32.xlu2 %v2298_v19  ;;  %660 = vmax.xlane.f32.xlu1 %v2302_v20 }
 0x22e   : > { %v590_v24 = vpop.f32.mrf.mxu1 }
 0x22f   : > { %v2318_v26 = vsel %vm607_vm1, %v590_v24, -1e+30 }
 0x230   : > { %690 = vmax.xlane.f32.xlu2 %v2308_v21  ;;  %692 = vmax.xlane.f32.xlu1 %v2312_v22 }
 0x236   : > { %v593_v28 = vpop.f32.mrf.mxu1 }
 0x237   : > { %v2328_v31 = vsel %vm607_vm1, %v593_v28, -1e+30 }
 0x238   : > { %662 = vmax.xlane.f32.xlu2 %v2322_v29  ;;  %694 = vmax.xlane.f32.xlu1 %v2318_v26 }
 0x23e   : > { %v596_v32 = vpop.f32.mrf.mxu1 }
 0x23f   : > { %v2338_v36 = vsel %vm607_vm1, %v596_v32, -1e+30 }
 0x240   : > { %664 = vmax.xlane.f32.xlu1 %v2332_v33  ;;  %696 = vmax.xlane.f32.xlu2 %v2328_v31 }
 0x246   : > { %v599_v38 = vpop.f32.mrf.mxu1 }
 0x247   : > { %v2360_v50 = vsel %vm607_vm1, %v599_v38, -1e+30 }
 0x248   : > { %666 = vmax.xlane.f32.xlu2 %v2342_v37  ;;  %698 = vmax.xlane.f32.xlu1 %v2338_v36 }
 0x24b   : > { %v673_v39 = vpop.xlane.xlu1 %672 }
 0x24c   : > { %v720_v27 = vsub.f32 %v2213_v48, %v673_v39 }
 0x24e   : > { %v602_v44 = vpop.f32.mrf.mxu1  ;;  %v768_v25 = vmul.f32 1.442695, %v720_v27 }
 0x24f   : > { %v2364_v53 = vsel %vm607_vm1, %v602_v44, -1e+30 }
 0x250   : > { %670 = vmax.xlane.f32.xlu2 %v2348_v41  ;;  %668 = vmax.xlane.f32.xlu1 %v2352_v42 }
 0x253   : > { %v643_v45 = vpop.xlane.xlu1 %642  ;;  %v675_v46 = vpop.xlane.xlu2 %674 }
 0x254   : > { %v705_v47 = vsub.f32 %v2218_v51, %v643_v45  ;;  %v721_v58 = vsub.f32 %v2222_v52, %v675_v46 }
 0x256   : > { %v738_v56 = vmul.f32 1.442695, %v705_v47  ;;  %v770_v59 = vmul.f32 1.442695, %v721_v58 }
 0x258   : > { %1709 = vpow2.f32 %v738_v56  ;;  %700 = vmax.xlane.f32.xlu1 %v2360_v50  ;;  %702 = vmax.xlane.f32.xlu2 %v2364_v53 }
 0x259   : > { %1711 = vpow2.f32 %v736_v49 }
 0x25a   : > { %1713 = vpow2.f32 %v770_v59 }
 0x25b   : > { %v645_v51 = vpop.xlane.xlu2 %644  ;;  %v649_v9 = vpop.xlane.xlu1 %648 }
 0x25c   : > { %v706_v60 = vsub.f32 %v2232_v55, %v645_v51  ;;  %v708_v13 = vsub.f32 %v2228_v54, %v649_v9 }
 0x25e   : > { %v2371_v62 = vpop.eup %1709  ;;  %v740_v0 = vmul.f32 1.442695, %v706_v60  ;;  %v744_v18 = vmul.f32 1.442695, %v708_v13 }
 0x25f   : > { %v2373_v3 = vpop.eup %1711 }
 0x260   : > { %800 = vadd.xlane.f32.xlu1 %v2373_v3  ;;  %802 = vadd.xlane.f32.xlu2 %v2371_v62  ;;  %1715 = vpow2.f32 %v740_v0  ;;  %v2378_v4 = vpop.eup %1713 }
 0x261   : > { %1717 = vpow2.f32 %v768_v25 }
 0x263   : > { %v677_v52 = vpop.xlane.xlu2 %676 }
 0x264   : > { %v722_v48 = vsub.f32 %v2238_v57, %v677_v52 }
 0x266   : > { %v772_v6 = vmul.f32 1.442695, %v722_v48  ;;  %v2380_v55 = vpop.eup %1715 }
 0x267   : > { %v2382_v11 = vpop.eup %1717  ;;  %804 = vadd.xlane.f32.xlu0 %v2380_v55 }
 0x268   : > { %1719 = vpow2.f32 %v772_v6  ;;  %834 = vadd.xlane.f32.xlu1 %v2378_v4  ;;  %832 = vadd.xlane.f32.xlu2 %v2382_v11 }
 0x26b   : > { %v647_v15 = vpop.xlane.xlu2 %646 }
 0x26c   : > { %v707_v57 = vsub.f32 %v2243_v61, %v647_v15 }
 0x26e   : > { %v2389_v17 = vpop.eup %1719  ;;  %v742_v23 = vmul.f32 1.442695, %v707_v57 }
 0x270   : > { %1721 = vpow2.f32 %v742_v23  ;;  %836 = vadd.xlane.f32.xlu2 %v2389_v17 }
 0x271   : > { %1723 = vpow2.f32 %v744_v18 }
 0x273   : > { %v679_v24 = vpop.xlane.xlu2 %678  ;;  %v683_v28 = vpop.xlane.xlu1 %682 }
 0x274   : > { %v723_v30 = vsub.f32 %v2248_v63, %v679_v24  ;;  %v725_v56 = vsub.f32 %v2252_v1, %v683_v28 }
 0x276   : > { %v2393_v32 = vpop.eup %1721  ;;  %v774_v34 = vmul.f32 1.442695, %v723_v30 }
 0x277   : > { %806 = vadd.xlane.f32.xlu1 %v2393_v32  ;;  %v2396_v54 = vpop.eup %1723 }
 0x278   : > { %1725 = vpow2.f32 %v774_v34  ;;  %808 = vadd.xlane.f32.xlu2 %v2396_v54 }
 0x27b   : > { %v681_v61 = vpop.xlane.xlu2 %680  ;;  %v653_v35 = vpop.xlane.xlu1 %652 }
 0x27c   : > { %v724_v38 = vsub.f32 %v2258_v2, %v681_v61  ;;  %v710_v43 = vsub.f32 %v2262_v5, %v653_v35  ;;  %v778_v2 = vmul.f32 1.442695, %v725_v56 }
 0x27e   : > { %v2400_v39 = vpop.eup %1725  ;;  %v776_v40 = vmul.f32 1.442695, %v724_v38  ;;  %v748_v63 = vmul.f32 1.442695, %v710_v43 }
 0x27f   : > { %838 = vadd.xlane.f32.xlu1 %v2400_v39 }
 0x280   : > { %1727 = vpow2.f32 %v776_v40 }
 0x281   : > { %1729 = vpow2.f32 %v748_v63 }
 0x283   : > { %v651_v44 = vpop.xlane.xlu2 %650  ;;  %v687_v45 = vpop.xlane.xlu1 %686 }
 0x284   : > { %v709_v46 = vsub.f32 %v2268_v7, %v651_v44  ;;  %v727_v9 = vsub.f32 %v2272_v8, %v687_v45 }
 0x286   : > { %v2405_v47 = vpop.eup %1727  ;;  %v746_v49 = vmul.f32 1.442695, %v709_v46  ;;  %v782_v13 = vmul.f32 1.442695, %v727_v9 }
 0x287   : > { %840 = vadd.xlane.f32.xlu2 %v2405_v47  ;;  %v2410_v51 = vpop.eup %1729 }
 0x288   : > { %1731 = vpow2.f32 %v746_v49 }
 0x289   : > { %1733 = vpow2.f32 %v778_v2 }
 0x28b   : > { %v685_v58 = vpop.xlane.xlu2 %684  ;;  %v657_v5 = vpop.xlane.xlu1 %656 }
 0x28c   : > { %v726_v27 = vsub.f32 %v2278_v10, %v685_v58  ;;  %v712_v7 = vsub.f32 %v2282_v12, %v657_v5 }
 0x28e   : > { %v2412_v59 = vpop.eup %1731  ;;  %v780_v60 = vmul.f32 1.442695, %v726_v27  ;;  %v752_v1 = vmul.f32 1.442695, %v712_v7 }
 0x28f   : > { %810 = vadd.xlane.f32.xlu1 %v2412_v59  ;;  %812 = vadd.xlane.f32.xlu2 %v2410_v51  ;;  %v2418_v48 = vpop.eup %1733 }
 0x290   : > { %1735 = vpow2.f32 %v780_v60 }
 0x291   : > { %1737 = vpow2.f32 %v752_v1 }
 0x293   : > { %v655_v25 = vpop.xlane.xlu2 %654  ;;  %v689_v0 = vpop.xlane.xlu1 %688 }
 0x294   : > { %v711_v52 = vsub.f32 %v2292_v16, %v655_v25  ;;  %v728_v12 = vsub.f32 %v2288_v14, %v689_v0 }
 0x296   : > { %v2420_v10 = vpop.eup %1735  ;;  %v750_v6 = vmul.f32 1.442695, %v711_v52  ;;  %v784_v18 = vmul.f32 1.442695, %v728_v12 }
 0x297   : > { %842 = vadd.xlane.f32.xlu1 %v2418_v48  ;;  %844 = vadd.xlane.f32.xlu2 %v2420_v10  ;;  %v2426_v16 = vpop.eup %1737 }
 0x298   : > { %1739 = vpow2.f32 %v750_v6 }
 0x299   : > { %1741 = vpow2.f32 %v782_v13 }
 0x29a   : > { %1743 = vpow2.f32 %v784_v18 }
 0x29b   : > { %v659_v15 = vpop.xlane.xlu2 %658  ;;  %v661_v57 = vpop.xlane.xlu1 %660 }
 0x29c   : > { %v713_v24 = vsub.f32 %v2298_v19, %v659_v15  ;;  %v714_v8 = vsub.f32 %v2302_v20, %v661_v57 }
 0x29e   : > { %v2428_v23 = vpop.eup %1739  ;;  %v754_v28 = vmul.f32 1.442695, %v713_v24  ;;  %v756_v34 = vmul.f32 1.442695, %v714_v8 }
 0x29f   : > { %814 = vadd.xlane.f32.xlu1 %v2428_v23  ;;  %816 = vadd.xlane.f32.xlu2 %v2426_v16  ;;  %v2434_v61 = vpop.eup %1741 }
 0x2a0   : > { %v2436_v35 = vpop.eup %1743  ;;  %1745 = vpow2.f32 %v754_v28 }
 0x2a1   : > { %1747 = vpow2.f32 %v756_v34 }
 0x2a3   : > { %v691_v14 = vpop.xlane.xlu2 %690  ;;  %v693_v30 = vpop.xlane.xlu1 %692 }
 0x2a4   : > { %v729_v38 = vsub.f32 %v2308_v21, %v691_v14  ;;  %v730_v19 = vsub.f32 %v2312_v22, %v693_v30 }
 0x2a6   : > { %v786_v40 = vmul.f32 1.442695, %v729_v38  ;;  %v788_v63 = vmul.f32 1.442695, %v730_v19  ;;  %v2442_v44 = vpop.eup %1745 }
 0x2a7   : > { %846 = vadd.xlane.f32.xlu1 %v2434_v61  ;;  %848 = vadd.xlane.f32.xlu2 %v2436_v35  ;;  %v2444_v45 = vpop.eup %1747 }
 0x2a8   : > { %1749 = vpow2.f32 %v786_v40 }
 0x2a9   : > { %1751 = vpow2.f32 %v788_v63 }
 0x2ab   : > { %v663_v20 = vpop.xlane.xlu2 %662  ;;  %v695_v43 = vpop.xlane.xlu1 %694 }
 0x2ac   : > { %v715_v46 = vsub.f32 %v2322_v29, %v663_v20  ;;  %v731_v27 = vsub.f32 %v2318_v26, %v695_v43 }
 0x2ae   : > { %v758_v21 = vmul.f32 1.442695, %v715_v46  ;;  %v2450_v2 = vpop.eup %1749  ;;  %v790_v60 = vmul.f32 1.442695, %v731_v27 }
 0x2af   : > { %818 = vadd.xlane.f32.xlu1 %v2442_v44  ;;  %820 = vadd.xlane.f32.xlu2 %v2444_v45  ;;  %v2452_v58 = vpop.eup %1751 }
 0x2b0   : > { %1753 = vpow2.f32 %v758_v21 }
 0x2b3   : > { %v665_v49 = vpop.xlane.xlu1 %664  ;;  %v697_v56 = vpop.xlane.xlu2 %696 }
 0x2b4   : > { %v716_v22 = vsub.f32 %v2332_v33, %v665_v49  ;;  %v732_v29 = vsub.f32 %v2328_v31, %v697_v56 }
 0x2b6   : > { %v760_v5 = vmul.f32 1.442695, %v716_v22  ;;  %v792_v25 = vmul.f32 1.442695, %v732_v29  ;;  %v1754_v33 = vpop.eup %1753 }
 0x2b7   : > { %850 = vadd.xlane.f32.xlu1 %v2450_v2  ;;  %852 = vadd.xlane.f32.xlu2 %v2452_v58 }
 0x2b8   : > { %1755 = vpow2.f32 %v760_v5 }
 0x2b9   : > { %1757 = vpow2.f32 %v790_v60 }
 0x2ba   : > { %1759 = vpow2.f32 %v792_v25 }
 0x2bb   : > { %v667_v7 = vpop.xlane.xlu2 %666  ;;  %v699_v1 = vpop.xlane.xlu1 %698 }
 0x2bc   : > { %v717_v52 = vsub.f32 %v2342_v37, %v667_v7  ;;  %v733_v24 = vsub.f32 %v2338_v36, %v699_v1 }
 0x2be   : > { %v1756_v0 = vpop.eup %1755  ;;  %v762_v26 = vmul.f32 1.442695, %v717_v52  ;;  %v794_v37 = vmul.f32 1.442695, %v733_v24 }
 0x2bf   : > { %822 = vadd.xlane.f32.xlu1 %v1754_v33  ;;  %824 = vadd.xlane.f32.xlu2 %v1756_v0  ;;  %v1758_v31 = vpop.eup %1757 }
 0x2c0   : > { %v1760_v15 = vpop.eup %1759  ;;  %1761 = vpow2.f32 %v762_v26 }
 0x2c3   : > { %v671_v6 = vpop.xlane.xlu2 %670  ;;  %v669_v9 = vpop.xlane.xlu1 %668 }
 0x2c4   : > { %v719_v12 = vsub.f32 %v2348_v41, %v671_v6  ;;  %v718_v13 = vsub.f32 %v2352_v42, %v669_v9 }
 0x2c6   : > { %v766_v57 = vmul.f32 1.442695, %v719_v12  ;;  %v764_v18 = vmul.f32 1.442695, %v718_v13  ;;  %v1762_v30 = vpop.eup %1761 }
 0x2c7   : > { %854 = vadd.xlane.f32.xlu1 %v1758_v31  ;;  %856 = vadd.xlane.f32.xlu2 %v1760_v15 }
 0x2c8   : > { %1763 = vpow2.f32 %v766_v57 }
 0x2c9   : > { %1765 = vpow2.f32 %v764_v18 }
 0x2ca   : > { %1767 = vpow2.f32 %v794_v37 }
 0x2cb   : > { %v701_v8 = vpop.xlane.xlu1 %700  ;;  %v703_v28 = vpop.xlane.xlu2 %702 }
 0x2cc   : > { %v734_v14 = vsub.f32 %v2360_v50, %v701_v8  ;;  %v735_v41 = vsub.f32 %v2364_v53, %v703_v28 }
 0x2ce   : > { %v1764_v42 = vpop.eup %1763  ;;  %v796_v34 = vmul.f32 1.442695, %v734_v14  ;;  %v798_v38 = vmul.f32 1.442695, %v735_v41 }
 0x2cf   : > { %v1766_v19 = vpop.eup %1765  ;;  %864 = vmatpush.xpose.msra.mxu2 %v1764_v42  ;;  %826 = vadd.xlane.f32.xlu1 %v1762_v30 }
 0x2d0   : > { %1769 = vpow2.f32 %v796_v34  ;;  %828 = vadd.xlane.f32.xlu2 %v1766_v19  ;;  %v1768_v40 = vpop.eup %1767 }
 0x2d1   : > { %1771 = vpow2.f32 %v798_v38 }
 0x2d3   : > { %865 = vmatpush.xpose.msra.mxu2 %v1766_v19  ;;  %v2464_v36 = vpop.xlane.xlu2 %802  ;;  %v801_v50 = vpop.xlane.xlu1 %800 }
 0x2d4   : > { %1773 = vrcp.f32 %v801_v50  ;;  %vm909_vm3 = vweird.f32 %v801_v50  ;;  %v929_v26 = vand.u32 2147483648, %v2464_v36  ;;  %vm923_vm7 = vweird.f32 %v2464_v36 }
 0x2d5   : > { %1775 = vrcp.f32 %v2464_v36 }
 0x2d6   : > { %v1770_v20 = vpop.eup %1769  ;;  %v930_v12 = vor.u32 1.1754944e-38, %v929_v26 }
 0x2d7   : > { %v1772_v43 = vpop.eup %1771  ;;  %866 = vmatpush.xpose.msra.mxu2 %v1762_v30  ;;  %858 = vadd.xlane.f32.xlu1 %v1768_v40 }
 0x2d8   : > { %860 = vadd.xlane.f32.xlu2 %v1770_v20  ;;  %884 = vmatpush.xpose.msra.mxu3 %v1772_v43 }
 0x2da   : > { %v1774_v21 = vpop.eup %1773  ;;  %v2481_v56 = vpop.xlane.xlu0 %804 }
 0x2db   : > { %867 = vmatpush.xpose.msra.mxu2 %v1756_v0  ;;  %v2466_v53 = vpop.xlane.xlu2 %832  ;;  %v2470_v63 = vpop.xlane.xlu1 %834  ;;  %v905_v49 = vmul.f32 %v1774_v21, %v801_v50  ;;  %1777 = vrcp.f32 %v2481_v56  ;;  %vm910_vm2 = vweird.f32 %v1774_v21  ;;  %v943_v57 = vand.u32 2147483648, %v2481_v56 }
 0x2dc   : > { %885 = vmatpush.xpose.msra.mxu3 %v1770_v20  ;;  %v1776_v22 = vpop.eup %1775  ;;  %vm911_vm4 = vmor %vm909_vm3, %vm910_vm2  ;;  %vm937_vm11 = vweird.f32 %v2481_v56 }
 0x2dd   : > { %vm924_vm6 = vweird.f32 %v1776_v22  ;;  %v944_v14 = vor.u32 1.1754944e-38, %v943_v57 }
 0x2de   : > { %vm925_vm8 = vmor %vm923_vm7, %vm924_vm6 }
 0x2df   : > { %868 = vmatpush.xpose.msra.mxu2 %v1754_v33  ;;  %830 = vadd.xlane.f32.xlu1 %v1764_v42 }
 0x2e0   : > { %886 = vmatpush.xpose.msra.mxu3 %v1768_v40 }
 0x2e1   : > { %v2491_v27 = vpop.eup %1777 }
 0x2e2   : > { %vm938_vm10 = vweird.f32 %v2491_v27 }
 0x2e3   : > { %869 = vmatpush.xpose.msra.mxu2 %v2444_v45  ;;  %v2472_v46 = vpop.xlane.xlu2 %836  ;;  %vm939_vm12 = vmor %vm937_vm11, %vm938_vm10 }
 0x2e4   : > { %887 = vmatpush.xpose.msra.mxu3 %v1760_v15 }
 0x2e7   : > { %870 = vmatpush.xpose.msra.mxu2 %v2442_v44  ;;  %862 = vadd.xlane.f32.xlu1 %v1772_v43  ;;  %v906_v44 = vsub.f32 1.0, %v905_v49 }
 0x2e8   : > { %888 = vmatpush.xpose.msra.mxu3 %v1758_v31 }
 0x2ea   : > { %v2478_v45 = vpop.xlane.xlu1 %806 }
 0x2eb   : > { %871 = vmatpush.xpose.msra.mxu2 %v2426_v16  ;;  %v2483_v5 = vpop.xlane.xlu2 %808  ;;  %v919_v16 = vmul.f32 %v1776_v22, %v2464_v36  ;;  %1779 = vrcp.f32 %v2478_v45  ;;  %v957_v19 = vand.u32 2147483648, %v2478_v45  ;;  %vm951_vm15 = vweird.f32 %v2478_v45 }
 0x2ec   : > { %889 = vmatpush.xpose.msra.mxu3 %v2452_v58  ;;  %v907_v58 = vmul.f32 %v1774_v21, %v906_v44  ;;  %1781 = vrcp.f32 %v2466_v53 }
 0x2ed   : > { %1783 = vrcp.f32 %v2483_v5  ;;  %v958_v49 = vor.u32 1.1754944e-38, %v957_v19 }
 0x2ee   : > { %1785 = vrcp.f32 %v2470_v63 }
 0x2ef   : > { %872 = vmatpush.xpose.msra.mxu2 %v2428_v23  ;;  %v920_v23 = vsub.f32 1.0, %v919_v16 }
 0x2f0   : > { %890 = vmatpush.xpose.msra.mxu3 %v2450_v2  ;;  %v908_v2 = vadd.f32 %v1774_v21, %v907_v58 }
 0x2f1   : > { %v921_v7 = vmul.f32 %v1776_v22, %v920_v23  ;;  %v2504_v0 = vpop.eup %1779 }
 0x2f2   : > { %v2493_v29 = vpop.xlane.xlu1 %838  ;;  %v947_v6 = vmul.f32 %v2504_v0, %v2478_v45  ;;  %v2522_v13 = vpop.eup %1781  ;;  %vm952_vm14 = vweird.f32 %v2504_v0 }
 0x2f3   : > { %873 = vmatpush.xpose.msra.mxu2 %v2410_v51  ;;  %v915_v51 = vand.u32 2147483648, %v801_v50  ;;  %v922_v33 = vadd.f32 %v1776_v22, %v921_v7  ;;  %v2526_v15 = vpop.eup %1783  ;;  %v1129_v24 = vmul.f32 %v2522_v13, %v2466_v53  ;;  %vm953_vm0 = vmor %vm951_vm15, %vm952_vm14  ;;  %vm1134_vm2 = vweird.f32 %v2522_v13 }
 0x2f4   : > { %891 = vmatpush.xpose.msra.mxu3 %v2436_v35  ;;  %v913_v35 = vand.u32 2147483647, %v801_v50  ;;  %v948_v31 = vsub.f32 1.0, %v947_v6  ;;  %v961_v37 = vmul.f32 %v2526_v15, %v2483_v5  ;;  %v2546_v41 = vpop.eup %1785  ;;  %vm966_vm3 = vweird.f32 %v2526_v15 }
 0x2f5   : > { %v916_v1 = vor.u32 1.1754944e-38, %v915_v51  ;;  %v926_v9 = vsel %vm925_vm8, %v1776_v22, %v922_v33  ;;  %v1130_v30 = vsub.f32 1.0, %v1129_v24  ;;  %v969_v51 = vand.u32 2147483647, %v2483_v5 }
 0x2f6   : > { %vm914_vm5 = vcmp.eq.f32.partialorder %v913_v35, 8.507059e+37  ;;  %v949_v28 = vmul.f32 %v2504_v0, %v948_v31  ;;  %vm1148_vm10 = vweird.f32 %v2546_v41  ;;  %v1151_v24 = vand.u32 2147483647, %v2470_v63 }
 0x2f7   : > { %874 = vmatpush.xpose.msra.mxu2 %v2412_v59  ;;  %v933_v59 = vmul.f32 %v2491_v27, %v2481_v56  ;;  %vm970_vm8 = vcmp.eq.f32.partialorder %v969_v51, 8.507059e+37 }
 0x2f8   : > { %892 = vmatpush.xpose.msra.mxu3 %v2434_v61  ;;  %v912_v61 = vsel %vm911_vm4, %v1774_v21, %v908_v2  ;;  %v950_v42 = vadd.f32 %v2504_v0, %v949_v28  ;;  %v1131_v21 = vmul.f32 %v2522_v13, %v1130_v30  ;;  %v971_v2 = vand.u32 2147483648, %v2483_v5 }
 0x2f9   : > { %v917_v25 = vsel %vm914_vm5, %v916_v1, %v912_v61  ;;  %vm1133_vm4 = vweird.f32 %v2466_v53  ;;  %vm965_vm5 = vweird.f32 %v2483_v5 }
 0x2fa   : > { %v2495_v60 = vpop.xlane.xlu2 %840  ;;  %v954_v43 = vsel %vm953_vm0, %v2504_v0, %v950_v42  ;;  %v1132_v16 = vadd.f32 %v2522_v13, %v1131_v21  ;;  %vm2587_vm6 = vmor %vm1133_vm4, %vm1134_vm2  ;;  %v309_v42 = vld [vmem:[%s266_s18 + $0x8] sm:$0xff]  ;;  %vm1161_vm4 = vweird.f32 %v2472_v46 }
 0x2fb   : > { %875 = vmatpush.xpose.msra.mxu2 %v2396_v54  ;;  %v934_v54 = vsub.f32 1.0, %v933_v59  ;;  %v1137_v59 = vand.u32 2147483647, %v2466_v53  ;;  %vm967_vm7 = vmor %vm965_vm5, %vm966_vm3 }
 0x2fc   : > { %893 = vmatpush.xpose.msra.mxu3 %v2420_v10 }
 0x2ff   : > { %876 = vmatpush.xpose.msra.mxu2 %v2393_v32  ;;  %v927_v32 = vand.u32 2147483647, %v2464_v36  ;;  %v1143_v36 = vmul.f32 %v2546_v41, %v2470_v63 }
 0x300   : > { %894 = vmatpush.xpose.msra.mxu3 %v2418_v48  ;;  %v935_v48 = vmul.f32 %v2491_v27, %v934_v54 }
 0x301   : > { %1352 = vxpose.xlu2.b32.start [1/16] (narrow) %v917_v25, 8  ;;  %vm928_vm9 = vcmp.eq.f32.partialorder %v927_v32, 8.507059e+37  ;;  %v1136_v25 = vsel %vm2587_vm6, %v2522_v13, %v1132_v16  ;;  %v1165_v16 = vand.u32 2147483647, %v2472_v46 }
 0x302   : > { %v2506_v10 = vpop.xlane.xlu1 %810  ;;  %v2508_v52 = vpop.xlane.xlu2 %812 }
 0x303   : > { %877 = vmatpush.xpose.msra.mxu2 %v2380_v55  ;;  %v931_v55 = vsel %vm928_vm9, %v930_v12, %v926_v9  ;;  %1787 = vrcp.f32 %v2506_v10  ;;  %vm1138_vm9 = vcmp.eq.f32.partialorder %v1137_v59, 8.507059e+37  ;;  %v983_v57 = vand.u32 2147483647, %v2506_v10 }
 0x304   : > { %895 = vmatpush.xpose.msra.mxu3 %v2405_v47  ;;  %v936_v47 = vadd.f32 %v2491_v27, %v935_v48  ;;  %1789 = vrcp.f32 %v2472_v46  ;;  %vm993_vm5 = vweird.f32 %v2508_v52 }
 0x305   : > { %1791 = vrcp.f32 %v2508_v52  ;;  %vm984_vm0 = vcmp.eq.f32.partialorder %v983_v57, 8.507059e+37 }
 0x306   : > { %v940_v8 = vsel %vm939_vm12, %v2491_v27, %v936_v47  ;;  %v1139_v27 = vand.u32 2147483648, %v2466_v53  ;;  %1793 = vrcp.f32 %v2493_v29  ;;  %v972_v53 = vor.u32 1.1754944e-38, %v971_v2 }
 0x307   : > { %878 = vmatpush.xpose.msra.mxu2 %v2371_v62  ;;  %v985_v47 = vand.u32 2147483648, %v2506_v10  ;;  %vm1147_vm12 = vweird.f32 %v2470_v63 }
 0x308   : > { %896 = vmatpush.xpose.msra.mxu3 %v2400_v39  ;;  %v941_v39 = vand.u32 2147483647, %v2481_v56  ;;  %v1140_v33 = vor.u32 1.1754944e-38, %v1139_v27  ;;  %vm2623_vm14 = vmor %vm1147_vm12, %vm1148_vm10  ;;  %vm1175_vm12 = vweird.f32 %v2493_v29 }
 0x309   : > { %1353 = vxpose.xlu2.b32.cont [2/16] (narrow) %v931_v55, 8  ;;  %v2550_v34 = vpop.eup %1787 }
 0x30a   : > { %v2529_v18 = vpop.xlane.xlu1 %842  ;;  %v2533_v62 = vpop.xlane.xlu2 %844  ;;  %vm942_vm13 = vcmp.eq.f32.partialorder %v941_v39, 8.507059e+37  ;;  %v975_v40 = vmul.f32 %v2550_v34, %v2506_v10  ;;  %v1141_v48 = vsel %vm1138_vm9, %v1140_v33, %v1136_v25  ;;  %vm980_vm11 = vweird.f32 %v2550_v34 }
 0x30b   : > { %879 = vmatpush.xpose.msra.mxu2 %v2373_v3  ;;  %v945_v3 = vsel %vm942_vm13, %v944_v14, %v940_v8  ;;  %v2570_v56 = vpop.eup %1789  ;;  %vm979_vm13 = vweird.f32 %v2506_v10  ;;  %vm1166_vm9 = vcmp.eq.f32.partialorder %v1165_v16, 8.507059e+37 }
 0x30c   : > { %897 = vmatpush.xpose.msra.mxu3 %v2389_v17  ;;  %v962_v17 = vsub.f32 1.0, %v961_v37  ;;  %v2575_v58 = vpop.eup %1791  ;;  %v1157_v61 = vmul.f32 %v2570_v56, %v2472_v46  ;;  %vm981_vm15 = vmor %vm979_vm13, %vm980_vm11  ;;  %vm1162_vm2 = vweird.f32 %v2570_v56 }
 0x30d   : > { %v989_v1 = vmul.f32 %v2575_v58, %v2508_v52  ;;  %v2607_v9 = vpop.eup %1793  ;;  %vm994_vm3 = vweird.f32 %v2575_v58  ;;  %vm2660_vm6 = vmor %vm1161_vm4, %vm1162_vm2  ;;  %vm1189_vm4 = vweird.f32 %v2495_v60 }
 0x30e   : > { %v963_v50 = vmul.f32 %v2526_v15, %v962_v17  ;;  %v1158_v26 = vsub.f32 1.0, %v1157_v61  ;;  %v1171_v10 = vmul.f32 %v2607_v9, %v2493_v29  ;;  %v308_v17 = vld [vmem:[%s266_s18] sm:$0xff]  ;;  %vm1176_vm10 = vweird.f32 %v2607_v9 }
 0x30f   : > { %v990_v12 = vsub.f32 1.0, %v989_v1  ;;  %880 = vmatmul.f32.vlgmr.msra.gmra.mxu2 %v308_v17 }
 0x310   : > { %898 = vmatpush.xpose.msra.mxu3 %v2378_v4  ;;  %v955_v4 = vand.u32 2147483647, %v2478_v45  ;;  %v1144_v45 = vsub.f32 1.0, %v1143_v36  ;;  %v964_v22 = vadd.f32 %v2526_v15, %v963_v50  ;;  %v1159_v8 = vmul.f32 %v2570_v56, %v1158_v26 }
 0x311   : > { %1354 = vxpose.xlu2.b32.cont [3/16] (narrow) %v945_v3, 8  ;;  %v991_v3 = vmul.f32 %v2575_v58, %v990_v12 }
 0x312   : > { %v2552_v38 = vpop.xlane.xlu1 %814  ;;  %v2564_v20 = vpop.xlane.xlu2 %816  ;;  %vm956_vm1 = vcmp.eq.f32.partialorder %v955_v4, 8.507059e+37  ;;  %v1145_v7 = vmul.f32 %v2546_v41, %v1144_v45  ;;  %v968_v5 = vsel %vm967_vm7, %v2526_v15, %v964_v22  ;;  %v1153_v15 = vand.u32 2147483648, %v2470_v63  ;;  %vm995_vm7 = vmor %vm993_vm5, %vm994_vm3 }
 0x313   : > { %v959_v44 = vsel %vm956_vm1, %v958_v49, %v954_v43  ;;  %1795 = vrcp.f32 %v2552_v38  ;;  %v973_v32 = vsel %vm970_vm8, %v972_v53, %v968_v5  ;;  %v986_v63 = vor.u32 1.1754944e-38, %v985_v47 }
 0x314   : > { %899 = vmatpush.xpose.msra.mxu3 %v2382_v11  ;;  %v976_v11 = vsub.f32 1.0, %v975_v40  ;;  %v1146_v6 = vadd.f32 %v2546_v41, %v1145_v7  ;;  %1797 = vrcp.f32 %v2495_v60  ;;  %v1154_v30 = vor.u32 1.1754944e-38, %v1153_v15 }
 0x315   : > { %1799 = vrcp.f32 %v2564_v20  ;;  %vm1152_vm1 = vcmp.eq.f32.partialorder %v1151_v24, 8.507059e+37  ;;  %v1160_v4 = vadd.f32 %v2570_v56, %v1159_v8  ;;  %v992_v50 = vadd.f32 %v2575_v58, %v991_v3 }
 0x316   : > { %v977_v54 = vmul.f32 %v2550_v34, %v976_v11  ;;  %v1150_v37 = vsel %vm2623_vm14, %v2546_v41, %v1146_v6  ;;  %v999_v45 = vand.u32 2147483648, %v2508_v52  ;;  %1801 = vrcp.f32 %v2529_v18  ;;  %vm2696_vm14 = vmor %vm1175_vm12, %vm1176_vm10 }
 0x317   : > { %v1155_v19 = vsel %vm1152_vm1, %v1154_v30, %v1150_v37  ;;  %900 = vmatmul.f32.vlgmr.msra.gmra.mxu3 %v309_v42  ;;  %v997_v11 = vand.u32 2147483647, %v2508_v52  ;;  %v1164_v27 = vsel %vm2660_vm6, %v2570_v56, %v1160_v4  ;;  %v996_v51 = vsel %vm995_vm7, %v2575_v58, %v992_v50 }
 0x318   : > { %v978_v55 = vadd.f32 %v2550_v34, %v977_v54  ;;  %v1013_v26 = vand.u32 2147483648, %v2552_v38  ;;  %vm1007_vm13 = vweird.f32 %v2552_v38  ;;  %v1011_v6 = vand.u32 2147483647, %v2552_v38 }
 0x319   : > { %1355 = vxpose.xlu2.b32.cont [4/16] (narrow) %v959_v44, 8  ;;  %v2611_v13 = vpop.eup %1795  ;;  %v1167_v44 = vand.u32 2147483648, %v2472_v46  ;;  %v1000_v46 = vor.u32 1.1754944e-38, %v999_v45  ;;  %vm998_vm8 = vcmp.eq.f32.partialorder %v997_v11, 8.507059e+37  ;;  %v1027_v17 = vand.u32 2147483648, %v2564_v20 }
 0x31a   : > { %v2577_v23 = vpop.xlane.xlu1 %846  ;;  %v2603_v0 = vpop.xlane.xlu2 %848  ;;  %v1003_v28 = vmul.f32 %v2611_v13, %v2552_v38  ;;  %v982_v14 = vsel %vm981_vm15, %v2550_v34, %v978_v55  ;;  %v1172_v34 = vsub.f32 1.0, %v1171_v10  ;;  %vm1008_vm11 = vweird.f32 %v2611_v13 }
 0x31b   : > { %v987_v41 = vsel %vm984_vm0, %v986_v63, %v982_v14  ;;  %v2642_v36 = vpop.eup %1797  ;;  %v1168_v61 = vor.u32 1.1754944e-38, %v1167_v44  ;;  %v1001_v1 = vsel %vm998_vm8, %v1000_v46, %v996_v51  ;;  %v1179_v55 = vand.u32 2147483647, %v2493_v29  ;;  %vm1009_vm15 = vmor %vm1007_vm13, %vm1008_vm11 }
 0x31c   : > { %v1004_v40 = vsub.f32 1.0, %v1003_v28  ;;  %v2648_v21 = vpop.eup %1799  ;;  %v1185_v2 = vmul.f32 %v2642_v36, %v2495_v60  ;;  %v1173_v59 = vmul.f32 %v2607_v9, %v1172_v34  ;;  %v1014_v24 = vor.u32 1.1754944e-38, %v1013_v26 }
 0x31d   : > { %v1017_v52 = vmul.f32 %v2648_v21, %v2564_v20  ;;  %v1169_v5 = vsel %vm1166_vm9, %v1168_v61, %v1164_v27  ;;  %v2677_v25 = vpop.eup %1801  ;;  %vm1012_vm0 = vcmp.eq.f32.partialorder %v1011_v6, 8.507059e+37  ;;  %vm1180_vm1 = vcmp.eq.f32.partialorder %v1179_v55, 8.507059e+37 }
 0x31e   : > { %v1005_v35 = vmul.f32 %v2611_v13, %v1004_v40  ;;  %v1186_v7 = vsub.f32 1.0, %v1185_v2  ;;  %v1174_v54 = vadd.f32 %v2607_v9, %v1173_v59  ;;  %v1199_v47 = vmul.f32 %v2677_v25, %v2529_v18 }
 0x31f   : > { %v1018_v56 = vsub.f32 1.0, %v1017_v52  ;;  %vm1190_vm2 = vweird.f32 %v2642_v36  ;;  %vm1022_vm3 = vweird.f32 %v2648_v21  ;;  %v1195_v63 = vand.u32 2147483648, %v2495_v60 }
 0x320   : > { %v1006_v58 = vadd.f32 %v2611_v13, %v1005_v35  ;;  %v1187_v15 = vmul.f32 %v2642_v36, %v1186_v7  ;;  %v1178_v39 = vsel %vm2696_vm14, %v2607_v9, %v1174_v54  ;;  %v1200_v8 = vsub.f32 1.0, %v1199_v47  ;;  %vm1191_vm6 = vmor %vm1189_vm4, %vm1190_vm2 }
 0x321   : > { %1356 = vxpose.xlu2.b32.cont [5/16] (narrow) %v973_v32, 8  ;;  %1384 = vxpose.xlu1.b32.start [1/16] (narrow) %v1141_v48, 8  ;;  %v1181_v32 = vand.u32 2147483648, %v2493_v29  ;;  %v1019_v29 = vmul.f32 %v2648_v21, %v1018_v56  ;;  %v1193_v42 = vand.u32 2147483647, %v2495_v60  ;;  %vm1021_vm5 = vweird.f32 %v2564_v20 }
 0x322   : > { %v2613_v31 = vpop.xlane.xlu1 %818  ;;  %v2644_v43 = vpop.xlane.xlu2 %820  ;;  %v1010_v57 = vsel %vm1009_vm15, %v2611_v13, %v1006_v58  ;;  %v1188_v14 = vadd.f32 %v2642_v36, %v1187_v15  ;;  %vm1023_vm7 = vmor %vm1021_vm5, %vm1022_vm3  ;;  %v1201_v60 = vmul.f32 %v2677_v25, %v1200_v8  ;;  %v1196_v45 = vor.u32 1.1754944e-38, %v1195_v63 }
 0x323   : > { %1803 = vrcp.f32 %v2613_v31  ;;  %v1182_v37 = vor.u32 1.1754944e-38, %v1181_v32  ;;  %v1015_v10 = vsel %vm1012_vm0, %v1014_v24, %v1010_v57  ;;  %v1020_v9 = vadd.f32 %v2648_v21, %v1019_v29 }
 0x324   : > { %1805 = vrcp.f32 %v2533_v62  ;;  %v1192_v34 = vsel %vm1191_vm6, %v2642_v36, %v1188_v14  ;;  %v1028_v11 = vor.u32 1.1754944e-38, %v1027_v17  ;;  %vm1194_vm8 = vcmp.eq.f32.partialorder %v1193_v42, 8.507059e+37 }
 0x325   : > { %1807 = vrcp.f32 %v2644_v43  ;;  %v1183_v28 = vsel %vm1180_vm1, %v1182_v37, %v1178_v39  ;;  %v1197_v22 = vsel %vm1194_vm8, %v1196_v45, %v1192_v34  ;;  %v1202_v36 = vadd.f32 %v2677_v25, %v1201_v60 }
 0x326   : > { %1809 = vrcp.f32 %v2577_v23  ;;  %vm1204_vm10 = vweird.f32 %v2677_v25  ;;  %v1041_v35 = vand.u32 2147483648, %v2613_v31  ;;  %vm1203_vm12 = vweird.f32 %v2529_v18 }
 0x327   : > { %v1209_v59 = vand.u32 2147483648, %v2529_v18  ;;  %vm1035_vm13 = vweird.f32 %v2613_v31  ;;  %v1039_v46 = vand.u32 2147483647, %v2613_v31  ;;  %vm2758_vm14 = vmor %vm1203_vm12, %vm1204_vm10  ;;  %v1207_v7 = vand.u32 2147483647, %v2529_v18 }
 0x328   : > { %v1042_v26 = vor.u32 1.1754944e-38, %v1041_v35  ;;  %v1055_v39 = vand.u32 2147483648, %v2644_v43  ;;  %vm1217_vm4 = vweird.f32 %v2533_v62  ;;  %v1223_v29 = vand.u32 2147483648, %v2533_v62 }
 0x329   : > { %1357 = vxpose.xlu2.b32.cont [6/16] (narrow) %v987_v41, 8  ;;  %1385 = vxpose.xlu1.b32.cont [2/16] (narrow) %v1155_v19, 8  ;;  %v2682_v53 = vpop.eup %1803  ;;  %v1025_v19 = vand.u32 2147483647, %v2564_v20  ;;  %v1024_v20 = vsel %vm1023_vm7, %v2648_v21, %v1020_v9  ;;  %v1210_v32 = vor.u32 1.1754944e-38, %v1209_v59  ;;  %vm1040_vm0 = vcmp.eq.f32.partialorder %v1039_v46, 8.507059e+37 }
 0x32a   : > { %v2650_v49 = vpop.xlane.xlu1 %850  ;;  %v2690_v48 = vpop.xlane.xlu2 %852  ;;  %v1031_v38 = vmul.f32 %v2682_v53, %v2613_v31  ;;  %vm1036_vm11 = vweird.f32 %v2682_v53  ;;  %vm1208_vm1 = vcmp.eq.f32.partialorder %v1207_v7, 8.507059e+37  ;;  %vm1049_vm5 = vweird.f32 %v2644_v43 }
 0x32b   : > { %v2716_v3 = vpop.eup %1805  ;;  %vm1026_vm9 = vcmp.eq.f32.partialorder %v1025_v19, 8.507059e+37  ;;  %vm1037_vm15 = vmor %vm1035_vm13, %vm1036_vm11  ;;  %v1053_v24 = vand.u32 2147483647, %v2644_v43  ;;  %v1221_v8 = vand.u32 2147483647, %v2533_v62  ;;  %v1224_v63 = vor.u32 1.1754944e-38, %v1223_v29 }
 0x32c   : > { %v1032_v13 = vsub.f32 1.0, %v1031_v38  ;;  %v2721_v30 = vpop.eup %1807  ;;  %v1213_v4 = vmul.f32 %v2716_v3, %v2533_v62  ;;  %v1029_v2 = vsel %vm1026_vm9, %v1028_v11, %v1024_v20  ;;  %vm1218_vm2 = vweird.f32 %v2716_v3 }
 0x32d   : > { %v1045_v40 = vmul.f32 %v2721_v30, %v2644_v43  ;;  %v2746_v27 = vpop.eup %1809  ;;  %vm1050_vm3 = vweird.f32 %v2721_v30  ;;  %vm2794_vm6 = vmor %vm1217_vm4, %vm1218_vm2  ;;  %v1056_v62 = vor.u32 1.1754944e-38, %v1055_v39  ;;  %vm1054_vm8 = vcmp.eq.f32.partialorder %v1053_v24, 8.507059e+37 }
 0x32e   : > { %v1033_v44 = vmul.f32 %v2682_v53, %v1032_v13  ;;  %v1214_v16 = vsub.f32 1.0, %v1213_v4  ;;  %v1227_v56 = vmul.f32 %v2746_v27, %v2577_v23  ;;  %vm1051_vm7 = vmor %vm1049_vm5, %vm1050_vm3  ;;  %vm1222_vm9 = vcmp.eq.f32.partialorder %v1221_v8, 8.507059e+37 }
 0x32f   : > { %v1046_v52 = vsub.f32 1.0, %v1045_v40  ;;  %vm1232_vm10 = vweird.f32 %v2746_v27  ;;  %vm1231_vm12 = vweird.f32 %v2577_v23  ;;  %vm1245_vm4 = vweird.f32 %v2603_v0 }
 0x330   : > { %v1034_v21 = vadd.f32 %v2682_v53, %v1033_v44  ;;  %v1228_v15 = vsub.f32 1.0, %v1227_v56  ;;  %v1237_v44 = vand.u32 2147483648, %v2577_v23 }
 0x331   : > { %1358 = vxpose.xlu2.b32.cont [7/16] (narrow) %v1001_v1, 8  ;;  %1386 = vxpose.xlu1.b32.cont [3/16] (narrow) %v1169_v5, 8  ;;  %v1206_v1 = vsel %vm2758_vm14, %v2677_v25, %v1202_v36  ;;  %v1215_v5 = vmul.f32 %v2716_v3, %v1214_v16  ;;  %v1047_v18 = vmul.f32 %v2721_v30, %v1046_v52  ;;  %vm2830_vm14 = vmor %vm1231_vm12, %vm1232_vm10  ;;  %v1235_v16 = vand.u32 2147483647, %v2577_v23 }
 0x332   : > { %v2684_v33 = vpop.xlane.xlu1 %822  ;;  %v2740_v50 = vpop.xlane.xlu2 %824  ;;  %v1038_v54 = vsel %vm1037_vm15, %v2682_v53, %v1034_v21  ;;  %v1211_v12 = vsel %vm1208_vm1, %v1210_v32, %v1206_v1  ;;  %v1229_v9 = vmul.f32 %v2746_v27, %v1228_v15  ;;  %v1238_v59 = vor.u32 1.1754944e-38, %v1237_v44 }
 0x333   : > { %1811 = vrcp.f32 %v2684_v33  ;;  %v1043_v25 = vsel %vm1040_vm0, %v1042_v26, %v1038_v54  ;;  %v1216_v55 = vadd.f32 %v2716_v3, %v1215_v5  ;;  %v1048_v53 = vadd.f32 %v2721_v30, %v1047_v18 }
 0x334   : > { %1813 = vrcp.f32 %v2603_v0  ;;  %v1230_v40 = vadd.f32 %v2746_v27, %v1229_v9  ;;  %v1069_v45 = vand.u32 2147483648, %v2684_v33  ;;  %vm1063_vm13 = vweird.f32 %v2684_v33 }
 0x335   : > { %1815 = vrcp.f32 %v2740_v50  ;;  %v1052_v14 = vsel %vm1051_vm7, %v2721_v30, %v1048_v53  ;;  %v1067_v11 = vand.u32 2147483647, %v2684_v33  ;;  %vm1236_vm1 = vcmp.eq.f32.partialorder %v1235_v16, 8.507059e+37 }
 0x336   : > { %1817 = vrcp.f32 %v2650_v49  ;;  %v1057_v19 = vsel %vm1054_vm8, %v1056_v62, %v1052_v14  ;;  %v1234_v21 = vsel %vm2830_vm14, %v2746_v27, %v1230_v40  ;;  %v1070_v23 = vor.u32 1.1754944e-38, %v1069_v45 }
 0x337   : > { %vm1068_vm0 = vcmp.eq.f32.partialorder %v1067_v11, 8.507059e+37  ;;  %v1239_v7 = vsel %vm1236_vm1, %v1238_v59, %v1234_v21  ;;  %v1083_v18 = vand.u32 2147483648, %v2740_v50  ;;  %v1249_v26 = vand.u32 2147483647, %v2603_v0 }
 0x338   : > { %vm1077_vm5 = vweird.f32 %v2740_v50  ;;  %v1081_v32 = vand.u32 2147483647, %v2740_v50  ;;  %vm1259_vm12 = vweird.f32 %v2650_v49  ;;  %v1263_v9 = vand.u32 2147483647, %v2650_v49 }
 0x339   : > { %1359 = vxpose.xlu2.b32.cont [8/16] (narrow) %v1015_v10, 8  ;;  %1387 = vxpose.xlu1.b32.cont [4/16] (narrow) %v1183_v28, 8  ;;  %v2750_v51 = vpop.eup %1811  ;;  %v1220_v28 = vsel %vm2794_vm6, %v2716_v3, %v1216_v55  ;;  %v1084_v53 = vor.u32 1.1754944e-38, %v1083_v18  ;;  %vm1250_vm8 = vcmp.eq.f32.partialorder %v1249_v26, 8.507059e+37  ;;  %v1279_v16 = vand.u32 2147483648, %v2690_v48 }
 0x33a   : > { %v2727_v41 = vpop.xlane.xlu1 %854  ;;  %v1059_v31 = vmul.f32 %v2750_v51, %v2684_v33  ;;  %v2776_v6 = vpop.xlane.xlu2 %856  ;;  %v1225_v4 = vsel %vm1222_vm9, %v1224_v63, %v1220_v28  ;;  %vm1064_vm11 = vweird.f32 %v2750_v51  ;;  %vm1082_vm9 = vcmp.eq.f32.partialorder %v1081_v32, 8.507059e+37 }
 0x33b   : > { %v2780_v47 = vpop.eup %1813  ;;  %vm1065_vm15 = vmor %vm1063_vm13, %vm1064_vm11  ;;  %vm1264_vm1 = vcmp.eq.f32.partialorder %v1263_v9, 8.507059e+37  ;;  %v1291_v18 = vand.u32 2147483647, %v2727_v41 }
 0x33c   : > { %v1060_v38 = vsub.f32 1.0, %v1059_v31  ;;  %v2784_v57 = vpop.eup %1815  ;;  %v1241_v10 = vmul.f32 %v2780_v47, %v2603_v0  ;;  %vm1246_vm2 = vweird.f32 %v2780_v47  ;;  %v1251_v31 = vand.u32 2147483648, %v2603_v0 }
 0x33d   : > { %v1073_v43 = vmul.f32 %v2784_v57, %v2740_v50  ;;  %v2813_v3 = vpop.eup %1817  ;;  %vm1078_vm3 = vweird.f32 %v2784_v57  ;;  %vm1247_vm6 = vmor %vm1245_vm4, %vm1246_vm2  ;;  %vm1273_vm4 = vweird.f32 %v2690_v48 }
 0x33e   : > { %v1061_v13 = vmul.f32 %v2750_v51, %v1060_v38  ;;  %v1242_v42 = vsub.f32 1.0, %v1241_v10  ;;  %vm1079_vm7 = vmor %vm1077_vm5, %vm1078_vm3  ;;  %v1252_v38 = vor.u32 1.1754944e-38, %v1251_v31  ;;  %vm1260_vm10 = vweird.f32 %v2813_v3 }
 0x33f   : > { %v1074_v34 = vsub.f32 1.0, %v1073_v43  ;;  %v1265_v43 = vand.u32 2147483648, %v2650_v49  ;;  %vm2887_vm14 = vmor %vm1259_vm12, %vm1260_vm10  ;;  %vm1287_vm12 = vweird.f32 %v2727_v41  ;;  %v1293_v31 = vand.u32 2147483648, %v2727_v41 }
 0x340   : > { %v1062_v30 = vadd.f32 %v2750_v51, %v1061_v13  ;;  %v1243_v36 = vmul.f32 %v2780_v47, %v1242_v42 }
 0x341   : > { %1360 = vxpose.xlu2.b32.cont [9/16] (narrow) %v1029_v2, 8  ;;  %1388 = vxpose.xlu1.b32.cont [5/16] (narrow) %v1197_v22, 8  ;;  %v1255_v2 = vmul.f32 %v2813_v3, %v2650_v49  ;;  %v1075_v35 = vmul.f32 %v2784_v57, %v1074_v34  ;;  %v1266_v34 = vor.u32 1.1754944e-38, %v1265_v43 }
 0x342   : > { %v2772_v58 = vpop.xlane.xlu1 %826  ;;  %v1066_v33 = vsel %vm1065_vm15, %v2750_v51, %v1062_v30  ;;  %v1244_v1 = vadd.f32 %v2780_v47, %v1243_v36  ;;  %v1277_v36 = vand.u32 2147483647, %v2690_v48 }
 0x343   : > { %1819 = vrcp.f32 %v2772_v58  ;;  %v2815_v60 = vpop.xlane.xlu2 %828  ;;  %v1256_v46 = vsub.f32 1.0, %v1255_v2  ;;  %v1071_v61 = vsel %vm1068_vm0, %v1070_v23, %v1066_v33  ;;  %v1076_v27 = vadd.f32 %v2784_v57, %v1075_v35 }
 0x344   : > { %1821 = vrcp.f32 %v2690_v48  ;;  %v1097_v28 = vand.u32 2147483648, %v2772_v58  ;;  %vm1091_vm13 = vweird.f32 %v2772_v58  ;;  %v1095_v14 = vand.u32 2147483647, %v2772_v58 }
 0x345   : > { %1823 = vrcp.f32 %v2815_v60  ;;  %v1257_v55 = vmul.f32 %v2813_v3, %v1256_v46  ;;  %v1080_v15 = vsel %vm1079_vm7, %v2784_v57, %v1076_v27  ;;  %v1111_v22 = vand.u32 2147483648, %v2815_v60 }
 0x346   : > { %1825 = vrcp.f32 %v2727_v41  ;;  %v1085_v24 = vsel %vm1082_vm9, %v1084_v53, %v1080_v15  ;;  %v1098_v49 = vor.u32 1.1754944e-38, %v1097_v28  ;;  %vm1096_vm0 = vcmp.eq.f32.partialorder %v1095_v14, 8.507059e+37 }
 0x347   : > { %v1258_v37 = vadd.f32 %v2813_v3, %v1257_v55  ;;  %vm1105_vm5 = vweird.f32 %v2815_v60  ;;  %v1109_v2 = vand.u32 2147483647, %v2815_v60  ;;  %v1112_v59 = vor.u32 1.1754944e-38, %v1111_v22 }
 0x348   : > { %v1280_v46 = vor.u32 1.1754944e-38, %v1279_v16  ;;  %vm1278_vm9 = vcmp.eq.f32.partialorder %v1277_v36, 8.507059e+37 }
 0x349   : > { %1361 = vxpose.xlu2.b32.cont [10/16] (narrow) %v1043_v25, 8  ;;  %1389 = vxpose.xlu1.b32.cont [6/16] (narrow) %v1211_v12, 8  ;;  %v2820_v20 = vpop.eup %1819  ;;  %v1248_v12 = vsel %vm1247_vm6, %v2780_v47, %v1244_v1  ;;  %v1262_v62 = vsel %vm2887_vm14, %v2813_v3, %v1258_v37 }
 0x34a   : > { %v2810_v17 = vpop.xlane.xlu1 %858  ;;  %v1087_v52 = vmul.f32 %v2820_v20, %v2772_v58  ;;  %v2848_v5 = vpop.eup %1821  ;;  %v1253_v39 = vsel %vm1250_vm8, %v1252_v38, %v1248_v12  ;;  %vm1092_vm11 = vweird.f32 %v2820_v20  ;;  %v1267_v40 = vsel %vm1264_vm1, %v1266_v34, %v1262_v62 }
 0x34b   : > { %v2855_v54 = vpop.eup %1823  ;;  %v1269_v25 = vmul.f32 %v2848_v5, %v2690_v48  ;;  %vm1093_vm15 = vmor %vm1091_vm13, %vm1092_vm11  ;;  %vm1274_vm2 = vweird.f32 %v2848_v5  ;;  %vm1110_vm8 = vcmp.eq.f32.partialorder %v1109_v2, 8.507059e+37  ;;  %vm1292_vm1 = vcmp.eq.f32.partialorder %v1291_v18, 8.507059e+37 }
 0x34c   : > { %v1088_v51 = vsub.f32 1.0, %v1087_v52  ;;  %v1101_v0 = vmul.f32 %v2855_v54, %v2815_v60  ;;  %v2876_v47 = vpop.eup %1825  ;;  %vm1106_vm3 = vweird.f32 %v2855_v54  ;;  %vm1275_vm6 = vmor %vm1273_vm4, %vm1274_vm2  ;;  %v1321_v14 = vand.u32 2147483648, %v2810_v17 }
 0x34d   : > { %v1270_v29 = vsub.f32 1.0, %v1269_v25  ;;  %v1283_v42 = vmul.f32 %v2876_v47, %v2727_v41  ;;  %vm1107_vm7 = vmor %vm1105_vm5, %vm1106_vm3  ;;  %vm1288_vm10 = vweird.f32 %v2876_v47  ;;  %vm1301_vm3 = vweird.f32 %v2776_v6 }
 0x34e   : > { %v1089_v50 = vmul.f32 %v2820_v20, %v1088_v51  ;;  %v1102_v8 = vsub.f32 1.0, %v1101_v0  ;;  %vm1289_vm14 = vmor %vm1287_vm12, %vm1288_vm10  ;;  %v1294_v0 = vor.u32 1.1754944e-38, %v1293_v31 }
 0x34f   : > { %v1271_v63 = vmul.f32 %v2848_v5, %v1270_v29  ;;  %v1284_v45 = vsub.f32 1.0, %v1283_v42  ;;  %v1305_v29 = vand.u32 2147483647, %v2776_v6 }
 0x350   : > { %v1090_v57 = vadd.f32 %v2820_v20, %v1089_v50 }
 0x351   : > { %1362 = vxpose.xlu2.b32.cont [11/16] (narrow) %v1057_v19, 8  ;;  %1390 = vxpose.xlu1.b32.cont [7/16] (narrow) %v1225_v4, 8  ;;  %v1103_v4 = vmul.f32 %v2855_v54, %v1102_v8  ;;  %v1272_v3 = vadd.f32 %v2848_v5, %v1271_v63  ;;  %v1285_v23 = vmul.f32 %v2876_v47, %v1284_v45  ;;  %vm1306_vm5 = vcmp.eq.f32.partialorder %v1305_v29, 8.507059e+37 }
 0x352   : > { %v2850_v56 = vpop.xlane.xlu1 %830  ;;  %v1094_v19 = vsel %vm1093_vm15, %v2820_v20, %v1090_v57  ;;  %v1322_v63 = vor.u32 1.1754944e-38, %v1321_v14 }
 0x353   : > { %1827 = vrcp.f32 %v2850_v56  ;;  %v1099_v30 = vsel %vm1096_vm0, %v1098_v49, %v1094_v19  ;;  %v1104_v11 = vadd.f32 %v2855_v54, %v1103_v4  ;;  %v1276_v52 = vsel %vm1275_vm6, %v2848_v5, %v1272_v3 }
 0x354   : > { %1829 = vrcp.f32 %v2776_v6  ;;  %v1281_v48 = vsel %vm1278_vm9, %v1280_v46, %v1276_v52  ;;  %v1286_v5 = vadd.f32 %v2876_v47, %v1285_v23  ;;  %v1125_v27 = vand.u32 2147483648, %v2850_v56 }
 0x355   : > { %1831 = vrcp.f32 %v2810_v17  ;;  %v1108_v21 = vsel %vm1107_vm7, %v2855_v54, %v1104_v11  ;;  %vm1119_vm13 = vweird.f32 %v2850_v56  ;;  %v1123_v54 = vand.u32 2147483647, %v2850_v56 }
 0x356   : > { %v1113_v60 = vsel %vm1110_vm8, %v1112_v59, %v1108_v21  ;;  %v1290_v25 = vsel %vm1289_vm14, %v2876_v47, %v1286_v5  ;;  %v1126_v55 = vor.u32 1.1754944e-38, %v1125_v27  ;;  %vm1315_vm7 = vweird.f32 %v2810_v17 }
 0x357   : > { %vm1124_vm0 = vcmp.eq.f32.partialorder %v1123_v54, 8.507059e+37 }
 0x359   : > { %1363 = vxpose.xlu2.b32.cont [12/16] (narrow) %v1071_v61, 8  ;;  %1391 = vxpose.xlu1.b32.cont [8/16] (narrow) %v1239_v7, 8  ;;  %v2880_v10 = vpop.eup %1827  ;;  %v2923_v7 = vpop.xlane.xlu2 %860 }
 0x35a   : > { %v1115_v58 = vmul.f32 %v2880_v10, %v2850_v56  ;;  %v2907_v20 = vpop.eup %1829  ;;  %vm1120_vm11 = vweird.f32 %v2880_v10  ;;  %1833 = vrcp.f32 %v2923_v7  ;;  %v1295_v56 = vsel %vm1292_vm1, %v1294_v0, %v1290_v25  ;;  %v863_v50 = vpop.xlane.xlu1 %862 }
 0x35b   : > { %v1297_v33 = vmul.f32 %v2907_v20, %v2776_v6  ;;  %v1832_v51 = vpop.eup %1831  ;;  %vm1121_vm15 = vmor %vm1119_vm13, %vm1120_vm11  ;;  %vm1302_vm2 = vweird.f32 %v2907_v20  ;;  %1835 = vrcp.f32 %v863_v50  ;;  %v1335_v4 = vand.u32 2147483648, %v2923_v7 }
 0x35c   : > { %v1116_v44 = vsub.f32 1.0, %v1115_v58  ;;  %v1311_v26 = vmul.f32 %v1832_v51, %v2810_v17  ;;  %vm1303_vm4 = vmor %vm1301_vm3, %vm1302_vm2  ;;  %vm1316_vm6 = vweird.f32 %v1832_v51  ;;  %vm1329_vm11 = vweird.f32 %v2923_v7 }
 0x35d   : > { %v1298_v61 = vsub.f32 1.0, %v1297_v33  ;;  %vm1317_vm8 = vmor %vm1315_vm7, %vm1316_vm6  ;;  %v1333_v49 = vand.u32 2147483647, %v2923_v7  ;;  %v1349_v45 = vand.u32 2147483648, %v863_v50 }
 0x35e   : > { %v1117_v35 = vmul.f32 %v2880_v10, %v1116_v44  ;;  %v1312_v38 = vsub.f32 1.0, %v1311_v26  ;;  %v1347_v44 = vand.u32 2147483647, %v863_v50 }
 0x35f   : > { %v1299_v12 = vmul.f32 %v2907_v20, %v1298_v61  ;;  %vm1334_vm13 = vcmp.eq.f32.partialorder %v1333_v49, 8.507059e+37 }
 0x360   : > { %v1118_v1 = vadd.f32 %v2880_v10, %v1117_v35  ;;  %v1834_v53 = vpop.eup %1833  ;;  %v1313_v47 = vmul.f32 %v1832_v51, %v1312_v38  ;;  %vm1348_vm1 = vcmp.eq.f32.partialorder %v1347_v44, 8.507059e+37 }
 0x361   : > { %1364 = vxpose.xlu2.b32.cont [13/16] (narrow) %v1085_v24, 8  ;;  %1392 = vxpose.xlu1.b32.cont [9/16] (narrow) %v1253_v39, 8  ;;  %v1300_v41 = vadd.f32 %v2907_v20, %v1299_v12  ;;  %v1307_v39 = vand.u32 2147483648, %v2776_v6  ;;  %v1325_v24 = vmul.f32 %v1834_v53, %v2923_v7  ;;  %v1836_v43 = vpop.eup %1835  ;;  %v1319_v6 = vand.u32 2147483647, %v2810_v17 }
 0x362   : > { %v1122_v32 = vsel %vm1121_vm15, %v2880_v10, %v1118_v1  ;;  %v1314_v28 = vadd.f32 %v1832_v51, %v1313_v47  ;;  %v1339_v13 = vmul.f32 %v1836_v43, %v863_v50  ;;  %vm1330_vm10 = vweird.f32 %v1834_v53 }
 0x363   : > { %v1127_v15 = vsel %vm1124_vm0, %v1126_v55, %v1122_v32  ;;  %v1304_v37 = vsel %vm1303_vm4, %v2907_v20, %v1300_v41  ;;  %v1308_v8 = vor.u32 1.1754944e-38, %v1307_v39  ;;  %v1326_v10 = vsub.f32 1.0, %v1325_v24  ;;  %vm1331_vm12 = vmor %vm1329_vm11, %vm1330_vm10 }
 0x364   : > { %v1318_v9 = vsel %vm1317_vm8, %v1832_v51, %v1314_v28  ;;  %vm1320_vm9 = vcmp.eq.f32.partialorder %v1319_v6, 8.507059e+37  ;;  %v1340_v58 = vsub.f32 1.0, %v1339_v13  ;;  %vm1344_vm14 = vweird.f32 %v1836_v43 }
 0x365   : > { %v1309_v57 = vsel %vm1306_vm5, %v1308_v8, %v1304_v37  ;;  %v1327_v62 = vmul.f32 %v1834_v53, %v1326_v10  ;;  %v1323_v42 = vsel %vm1320_vm9, %v1322_v63, %v1318_v9  ;;  %vm1343_vm15 = vweird.f32 %v863_v50 }
 0x366   : > { %v1341_v17 = vmul.f32 %v1836_v43, %v1340_v58  ;;  %vm1345_vm0 = vmor %vm1343_vm15, %vm1344_vm14  ;;  %v1350_v20 = vor.u32 1.1754944e-38, %v1349_v45 }
 0x367   : > { %v1328_v19 = vadd.f32 %v1834_v53, %v1327_v62 }
 0x368   : > { %v1342_v3 = vadd.f32 %v1836_v43, %v1341_v17 }
 0x369   : > { %1365 = vxpose.xlu2.b32.cont [14/16] (narrow) %v1099_v30, 8  ;;  %1393 = vxpose.xlu1.b32.cont [10/16] (narrow) %v1267_v40, 8  ;;  %v1332_v34 = vsel %vm1331_vm12, %v1834_v53, %v1328_v19  ;;  %v1336_v30 = vor.u32 1.1754944e-38, %v1335_v4 }
 0x36a   : > { %v1346_v11 = vsel %vm1345_vm0, %v1836_v43, %v1342_v3 }
 0x36b   : > { %v1337_v40 = vsel %vm1334_vm13, %v1336_v30, %v1332_v34  ;;  %v1351_v22 = vsel %vm1348_vm1, %v1350_v20, %v1346_v11 }
 0x371   : > { %1366 = vxpose.xlu2.b32.cont [15/16] (narrow) %v1113_v60, 8  ;;  %1394 = vxpose.xlu1.b32.cont [11/16] (narrow) %v1281_v48, 8 }
 0x379   : > { %1367 = vxpose.xlu2.b32.end [16/16] (narrow) %v1127_v15, 8  ;;  %1395 = vxpose.xlu1.b32.cont [12/16] (narrow) %v1295_v56, 8 }
 0x381   : > { %1396 = vxpose.xlu1.b32.cont [13/16] (narrow) %v1309_v57, 8 }
 0x389   : > { %1397 = vxpose.xlu1.b32.cont [14/16] (narrow) %v1323_v42, 8 }
 0x391   : > { %1398 = vxpose.xlu1.b32.cont [15/16] (narrow) %v1337_v40, 8 }
 0x392   : > { %v881_v36 = vpop.f32.mrf.mxu2 }
 0x399   : > { %1399 = vxpose.xlu1.b32.end [16/16] (narrow) %v1351_v22, 8 }
 0x39a   : > { %v1368_v16 = vpop.trf.xlu2  ;;  %v901_v21 = vpop.f32.mrf.mxu3 }
 0x39b   : > { %v1416_v2 = vperm.slane %v1368_v16, 0 }
 0x39d   : > { %v1418_v52 = vmul.f32 %v1416_v2, %v881_v36 }
 0x39f   : > { %1420 = vst [vmem:[%s299_s24] sm:$0xff] %v1418_v52 }
 0x3c5   : > { %v1400_v33 = vpop.trf.xlu1 }
 0x3c6   : > { %v1417_v35 = vperm.slane %v1400_v33, 0 }
 0x3c8   : > { %v1419_v23 = vmul.f32 %v1417_v35, %v901_v21 }
 0x3ca   : > { %1421 = vst [vmem:[%s299_s24 + $0x8] sm:$0xff] %v1419_v23 }
 0x3cb   : > { %1954 = shalt.err (!%p1951_p13)
}
 0x3cc   : > { %s2017_s11 = smov 128   ;;  %s2018_s19 = smov 8  }
 0x3cd   : > { %1638 = dma.vmem_to_hbm [thread:$0]  (%p2094_p9), %s1438_s21, 256, %s1440_s22, %s1423_s23, %s2017_s11, %s2017_s11, %s2018_s19  }
 0x3ce PF: > { %s3032_s1 = sld [smem:[#allocation14_spill]]  ;;  %s1454_s16 = sand.u32 1, %s1993_s12  }
 0x3cf   : > { %p1651_p0 = pnand %p1581_p12, %p2101_p11  ;;  %s1455_s20 = scalar_lea.sflag [#allocation4], %s1454_s16 }
 0x3d1   : > { %p1652_p1 = pneg %p1651_p0 }
 0x3d3   : > { %1988 = dma.done.wait (%p1652_p1), %s1455_s20, 256  }
 0x3d4   : > { %1990 = vsyncadd (%p1652_p1), %s1455_s20, 4294967040  ;;  %s22_s17 = sadd.s32 1, %s3032_s1   ;;  %s3033_s14 = sld [smem:[#allocation12_spill]] }
 0x3d5   : > { %p19_p2 = scmp.ge.s32.totalorder %s22_s17, 4   ;;  %s3034_s26 = sld [smem:[#allocation16_spill]] }
 0x3d6   : > { %s3035_s15 = sld [smem:[#allocation13_spill]]  ;;  %s3037_s12 = smov %s1997_s13 }
 0x3d7   : > { %s3036_s16 = sld [smem:[#allocation15_spill]]  ;;  %21 = sbr.rel (!%p19_p2) target bundleno = 10 (0xa), region = 101 }
 0x3da   : > { %s3038_s13 = smov %s3033_s14 }
 0x3db   : > { %s3039_s14 = smov %s3034_s26 }
 0x3dc   :  { %1461 = vsyncpa [#allocation3], 1 }
 0x3dd   :  { %1463 = vsyncpa [#allocation3 + $0x1], 1 }
 0x3de   :  { %1464 = vsyncpa [#allocation6], 1 }
 0x3df   :  { %1466 = vsyncpa [#allocation6 + $0x1], 1 }
 0x3e0   :  { %1467 = vsyncpa [#allocation4], 1 }
 0x3e1   :  { %1469 = vsyncpa [#allocation4 + $0x1], 1 }

</bundles_post_ra>
